<compile_context>
chip_gen: v5e
topology: v5e:2x2
jax: 0.10.0
libtpu: 0.0.40
codegen_flags: <defaults>
</compile_context>

<pallas_src>
import functools

import jax
import jax.numpy as jnp
from jax import lax
from jax.experimental import pallas as pl
from jax.experimental.pallas import tpu as pltpu

# ---------------- model hyper-parameters (small, TPU-friendly) -------------
B = 2            # batch
S = 8            # sequence length
H = 128          # hidden size (stands in for 768)
NH = 2           # attention heads
DH = H // NH     # real head dim (64)
DP = 128         # per-head lane padding: each head's Q/K/V block is 128 lanes
FF = 256         # FFN intermediate size
NLAYERS = 2      # encoder layers
VOCAB = 64       # vocab size
NTYPES = 2       # token-type vocab
OUTPUT_DIM = 2   # classifier output classes
CLS_PAD = 128    # lane-dense padding for the 2-class head
LN_EPS = 1e-12
LEAKY_SLOPE = 0.01           # nn.LeakyReLU default negative_slope
QKV_W = NH * 3 * DP          # fused, head-padded QKV width (768)


def _layernorm(x, g, b, eps):
    mu = jnp.mean(x, axis=-1, keepdims=True)
    var = jnp.mean((x - mu) ** 2, axis=-1, keepdims=True)
    return (x - mu) * lax.rsqrt(var + eps) * g + b


# --------------------------- the single fused kernel ------------------------
def _fused_bert_kernel(emb_ref, mask_ref, eg_ref, eb_ref,
                       wqkv_ref, bqkv_ref, wo_ref, bo_ref,
                       ln1g_ref, ln1b_ref, w1_ref, b1_ref,
                       w2_ref, b2_ref, ln2g_ref, ln2b_ref,
                       pw_ref, pb_ref, hw1_ref, hb1_ref,
                       hw2_ref, hb2_ref, hw3_ref, hb3_ref,
                       out_ref, h_ref, *, eps, slope):
    l = pl.program_id(1)

    # ---- layer step 0: embedding LayerNorm (folded in, no separate launch)
    @pl.when(l == 0)
    def _():
        h_ref[...] = _layernorm(emb_ref[...].astype(jnp.float32),
                                eg_ref[...], eb_ref[...], eps)

    x = h_ref[...]                                             # [S, H] f32, VMEM-resident

    # ---- fused head-padded Q|K|V projection: one bf16 MXU matmul, f32 acc
    qkv = jnp.dot(x.astype(jnp.bfloat16), wqkv_ref[...],
                  preferred_element_type=jnp.float32) + bqkv_ref[...]

    # ---- attention: 128-lane aligned per-head blocks, no k.T transpose,
    #      per-head out-projection partials accumulated in f32 (no lane concat)
    scale = 1.0 / (DH ** 0.5)
    mb = jnp.broadcast_to(mask_ref[...], (S, S))               # hoisted out of head loop
    attn = jnp.zeros((S, H), jnp.float32)
    for hh in range(NH):                                       # static unroll, NH = 2
        base = hh * 3 * DP
        qh = qkv[:, base:base + DP]                            # [S, DP] (64 real + 64 zero)
        kh = qkv[:, base + DP:base + 2 * DP]
        vh = qkv[:, base + 2 * DP:base + 3 * DP]
        s = lax.dot_general(qh, kh, (((1,), (1,)), ((), ())),  # q @ k^T without vxpose
                            preferred_element_type=jnp.float32) * scale
        p = jax.nn.softmax(s + mb, axis=-1)
        ctx = jnp.dot(p, vh, preferred_element_type=jnp.float32)     # [S, DP]
        attn = attn + jnp.dot(ctx.astype(jnp.bfloat16), wo_ref[hh],
                              preferred_element_type=jnp.float32)
    attn = attn + bo_ref[...]

    # ---- residual + LayerNorm 1 (stays in vregs)
    h1 = _layernorm(attn + x, ln1g_ref[...], ln1b_ref[...], eps)

    # ---- FFN (w1 -> GELU -> w2) + residual + LayerNorm 2
    # TODO(synk): HF bert-base uses the exact erf GELU; tanh approximation kept
    # (erf has no guaranteed Mosaic lowering), ~1e-3-level activation drift.
    ff = jnp.dot(h1.astype(jnp.bfloat16), w1_ref[...],
                 preferred_element_type=jnp.float32) + b1_ref[...]
    ff = jax.nn.gelu(ff)
    ff = jnp.dot(ff.astype(jnp.bfloat16), w2_ref[...],
                 preferred_element_type=jnp.float32) + b2_ref[...]
    h2 = _layernorm(ff + h1, ln2g_ref[...], ln2b_ref[...], eps)
    h_ref[...] = h2

    # ---- last layer step: pooler(tanh) + dropout + linear1/2/3 + LeakyReLU
    @pl.when(l == pl.num_programs(1) - 1)
    def _():
        cls = h2[0:1, :]                                       # [CLS] row, [1, H]
        pooled = jnp.tanh(
            jnp.dot(cls.astype(jnp.bfloat16), pw_ref[...],
                    preferred_element_type=jnp.float32) + pb_ref[...])
        # TODO(synk): dropout is identity (inference); training-mode parity would
        # need pltpu.prng_seed + pltpu.prng_random_bits masking here.
        y = jnp.dot(pooled.astype(jnp.bfloat16), hw1_ref[...],
                    preferred_element_type=jnp.float32) + hb1_ref[...]
        y = jnp.where(y >= 0, y, slope * y)                    # LeakyReLU
        y = jnp.dot(y.astype(jnp.bfloat16), hw2_ref[...],
                    preferred_element_type=jnp.float32) + hb2_ref[...]
        y = jnp.where(y >= 0, y, slope * y)
        y = jnp.dot(y.astype(jnp.bfloat16), hw3_ref[...],
                    preferred_element_type=jnp.float32) + hb3_ref[...]
        y = jnp.where(y >= 0, y, slope * y)                    # [1, CLS_PAD]
        out_ref[...] = jnp.broadcast_to(y, (8, CLS_PAD)).astype(out_ref.dtype)


# ------------------------------ BlockSpec helpers ---------------------------
def _per_batch_spec(shape):
    rest = tuple(shape[1:])
    return pl.BlockSpec((None,) + rest, lambda b, l, _n=len(rest): (b,) + (0,) * _n)


def _per_layer_spec(shape):
    rest = tuple(shape[1:])
    return pl.BlockSpec((None,) + rest, lambda b, l, _n=len(rest): (l,) + (0,) * _n)


def _shared_spec(shape):
    shp = tuple(shape)
    return pl.BlockSpec(shp, lambda b, l, _n=len(shp): (0,) * _n)


# ------------------------------ forward pass --------------------------------
def bert_nonlinear_forward(params, input_ids, token_type_ids, attention_mask):
    # embeddings: gathers are XLA glue; everything after runs in ONE Pallas kernel
    emb = (jnp.take(params["word_emb"], input_ids, axis=0)
           + params["pos_emb"][None, :, :]
           + jnp.take(params["type_emb"], token_type_ids, axis=0))     # [B, S, H]
    add_mask = ((1.0 - attention_mask.astype(jnp.float32)) * -10000.0
                ).reshape(B, 1, S)                                      # [B, 1, S]

    args = (emb, add_mask, params["emb_ln_g"], params["emb_ln_b"],
            params["wqkv"], params["bqkv"], params["wo"], params["bo"],
            params["ln1_g"], params["ln1_b"], params["w1"], params["b1"],
            params["w2"], params["b2"], params["ln2_g"], params["ln2_b"],
            params["pool_w"], params["pool_b"],
            params["head_w1"], params["head_b1"],
            params["head_w2"], params["head_b2"],
            params["head_w3"], params["head_b3"])

    in_specs = [
        _per_batch_spec(emb.shape),                # emb
        _per_batch_spec(add_mask.shape),           # additive mask
        _shared_spec(params["emb_ln_g"].shape),
        _shared_spec(params["emb_ln_b"].shape),
        _per_layer_spec(params["wqkv"].shape),
        _per_layer_spec(params["bqkv"].shape),
        _per_layer_spec(params["wo"].shape),
        _per_layer_spec(params["bo"].shape),
        _per_layer_spec(params["ln1_g"].shape),
        _per_layer_spec(params["ln1_b"].shape),
        _per_layer_spec(params["w1"].shape),
        _per_layer_spec(params["b1"].shape),
        _per_layer_spec(params["w2"].shape),
        _per_layer_spec(params["b2"].shape),
        _per_layer_spec(params["ln2_g"].shape),
        _per_layer_spec(params["ln2_b"].shape),
        _shared_spec(params["pool_w"].shape),
        _shared_spec(params["pool_b"].shape),
        _shared_spec(params["head_w1"].shape),
        _shared_spec(params["head_b1"].shape),
        _shared_spec(params["head_w2"].shape),
        _shared_spec(params["head_b2"].shape),
        _shared_spec(params["head_w3"].shape),
        _shared_spec(params["head_b3"].shape),
    ]

    # rough advisory cost so XLA overlaps the embedding gathers with the kernel
    flops = B * NLAYERS * (2 * S * H * QKV_W
                           + NH * (4 * S * S * DP + 2 * S * DP * H)
                           + 4 * S * H * FF) + B * (6 * H * H + 2 * H * CLS_PAD)
    transcend = B * NLAYERS * (NH * S * S + S * FF) + B * H
    bytes_acc = (B * NLAYERS * 2 * (H * QKV_W + NH * DP * H + 2 * H * FF)
                 + emb.size * 4)

    out = pl.pallas_call(
        functools.partial(_fused_bert_kernel, eps=LN_EPS, slope=LEAKY_SLOPE),
        out_shape=jax.ShapeDtypeStruct((B, 8, CLS_PAD), jnp.float32),
        grid=(B, NLAYERS),
        in_specs=in_specs,
        out_specs=_per_batch_spec((B, 8, CLS_PAD)),
        scratch_shapes=[pltpu.VMEM((S, H), jnp.float32)],    # persistent hidden state
        compiler_params=pltpu.CompilerParams(
            dimension_semantics=("parallel", "arbitrary")),   # batch across TCs on v7x
        cost_estimate=pl.CostEstimate(flops=flops, transcendentals=transcend,
                                      bytes_accessed=bytes_acc),
    )(*args)
    return out[:, 0, :OUTPUT_DIM]                             # [B, 2]


# ------------------------- parameter construction ---------------------------
def init_params(key):
    keys = iter(jax.random.split(key, 64))
    std = 0.02
    f32, bf16 = jnp.float32, jnp.bfloat16
    p = {}
    p["word_emb"] = (jax.random.normal(next(keys), (VOCAB, H)) * std).astype(f32)
    p["pos_emb"] = (jax.random.normal(next(keys), (S, H)) * std).astype(f32)
    p["type_emb"] = (jax.random.normal(next(keys), (NTYPES, H)) * std).astype(f32)
    p["emb_ln_g"] = jnp.ones((1, H), f32)
    p["emb_ln_b"] = jnp.zeros((1, H), f32)

    acc = {k: [] for k in ("wqkv", "bqkv", "wo", "bo", "ln1_g", "ln1_b",
                           "w1", "b1", "w2", "b2", "ln2_g", "ln2_b")}
    for _ in range(NLAYERS):
        wq = jax.random.normal(next(keys), (H, H)) * std
        wk = jax.random.normal(next(keys), (H, H)) * std
        wv = jax.random.normal(next(keys), (H, H)) * std
        # Head-padded fused QKV: per head, three lane-aligned 128-wide blocks
        # (real DH=64 columns + 64 zero lanes) so kernel slices never split a vreg.
        wqkv = jnp.zeros((H, QKV_W), f32)
        for hh in range(NH):
            base, c0 = hh * 3 * DP, hh * DH
            wqkv = wqkv.at[:, base:base + DH].set(wq[:, c0:c0 + DH])
            wqkv = wqkv.at[:, base + DP:base + DP + DH].set(wk[:, c0:c0 + DH])
            wqkv = wqkv.at[:, base + 2 * DP:base + 2 * DP + DH].set(wv[:, c0:c0 + DH])
        acc["wqkv"].append(wqkv.astype(bf16))
        acc["bqkv"].append(jnp.zeros((1, QKV_W), f32))   # real biases go in the :DH slots

        wo = jax.random.normal(next(keys), (H, H)) * std
        woh = jnp.zeros((NH, DP, H), f32)                # pad rows must stay zero
        for hh in range(NH):
            woh = woh.at[hh, :DH, :].set(wo[hh * DH:(hh + 1) * DH, :])
        acc["wo"].append(woh.astype(bf16))
        acc["bo"].append(jnp.zeros((1, H), f32))

        acc["ln1_g"].append(jnp.ones((1, H), f32))
        acc["ln1_b"].append(jnp.zeros((1, H), f32))
        acc["w1"].append((jax.random.normal(next(keys), (H, FF)) * std).astype(bf16))
        acc["b1"].append(jnp.zeros((1, FF), f32))
        acc["w2"].append((jax.random.normal(next(keys), (FF, H)) * std).astype(bf16))
        acc["b2"].append(jnp.zeros((1, H), f32))
        acc["ln2_g"].append(jnp.ones((1, H), f32))
        acc["ln2_b"].append(jnp.zeros((1, H), f32))

    for k, v in acc.items():
        p[k] = jnp.stack(v)                              # [NLAYERS, ...] stacked weights

    p["pool_w"] = (jax.random.normal(next(keys), (H, H)) * std).astype(bf16)
    p["pool_b"] = jnp.zeros((1, H), f32)

    # BertNonLinear head: linear1/linear2 (H->H), linear3 (H->OUTPUT_DIM)
    p["head_w1"] = (jax.random.normal(next(keys), (H, H)) * std).astype(bf16)
    p["head_b1"] = jnp.zeros((1, H), f32)
    p["head_w2"] = (jax.random.normal(next(keys), (H, H)) * std).astype(bf16)
    p["head_b2"] = jnp.zeros((1, H), f32)
    xavier_std = (2.0 / (H + OUTPUT_DIM)) ** 0.5
    w3 = jax.random.normal(next(keys), (H, OUTPUT_DIM)) * xavier_std
    p["head_w3"] = (jnp.zeros((H, CLS_PAD), f32)
                    .at[:, :OUTPUT_DIM].set(w3)).astype(bf16)   # lane-dense, zero pad
    p["head_b3"] = jnp.zeros((1, CLS_PAD), f32)
    return p


# ---------------------------------- main -------------------------------------
if __name__ == "__main__":
    key = jax.random.PRNGKey(0)
    k_param, k_ids, k_types = jax.random.split(key, 3)

    params = init_params(k_param)
    input_ids = jax.random.randint(k_ids, (B, S), 0, VOCAB, dtype=jnp.int32)
    token_type_ids = jax.random.randint(k_types, (B, S), 0, NTYPES,
                                        dtype=jnp.int32)
    attention_mask = jnp.ones((B, S), dtype=jnp.int32)

    logits = bert_nonlinear_forward(params, input_ids, token_type_ids,
                                    attention_mask)
    jax.block_until_ready(logits)
    assert logits.shape == (B, OUTPUT_DIM)
    assert bool(jnp.all(jnp.isfinite(logits)))
    print("KERNEL_OK")
</pallas_src>

<mosaic_0001>
module attributes {stable_mosaic.version = 11 : i64} {
  func.func @_fused_bert_kernel(%arg0: i32, %arg1: i32, %arg2: memref<1x8x128xf32, #tpu.memory_space<vmem>>, %arg3: memref<1x1x8xf32, #tpu.memory_space<vmem>>, %arg4: memref<1x128xf32, #tpu.memory_space<vmem>>, %arg5: memref<1x128xf32, #tpu.memory_space<vmem>>, %arg6: memref<1x128x768xbf16, #tpu.memory_space<vmem>>, %arg7: memref<1x1x768xf32, #tpu.memory_space<vmem>>, %arg8: memref<1x2x128x128xbf16, #tpu.memory_space<vmem>>, %arg9: memref<1x1x128xf32, #tpu.memory_space<vmem>>, %arg10: memref<1x1x128xf32, #tpu.memory_space<vmem>>, %arg11: memref<1x1x128xf32, #tpu.memory_space<vmem>>, %arg12: memref<1x128x256xbf16, #tpu.memory_space<vmem>>, %arg13: memref<1x1x256xf32, #tpu.memory_space<vmem>>, %arg14: memref<1x256x128xbf16, #tpu.memory_space<vmem>>, %arg15: memref<1x1x128xf32, #tpu.memory_space<vmem>>, %arg16: memref<1x1x128xf32, #tpu.memory_space<vmem>>, %arg17: memref<1x1x128xf32, #tpu.memory_space<vmem>>, %arg18: memref<128x128xbf16, #tpu.memory_space<vmem>>, %arg19: memref<1x128xf32, #tpu.memory_space<vmem>>, %arg20: memref<128x128xbf16, #tpu.memory_space<vmem>>, %arg21: memref<1x128xf32, #tpu.memory_space<vmem>>, %arg22: memref<128x128xbf16, #tpu.memory_space<vmem>>, %arg23: memref<1x128xf32, #tpu.memory_space<vmem>>, %arg24: memref<128x128xbf16, #tpu.memory_space<vmem>>, %arg25: memref<1x128xf32, #tpu.memory_space<vmem>>, %arg26: memref<1x8x128xf32, #tpu.memory_space<vmem>>, %arg27: memref<8x128xf32, #tpu.memory_space<vmem>>) attributes {dimension_semantics = [#tpu.dimension_semantics<parallel>, #tpu.dimension_semantics<arbitrary>], iteration_bounds = array<i64: 2, 2>, scalar_prefetch = 0 : i64, scratch_operands = 1 : i64, tpu.core_type = #tpu.core_type<tc>, window_params = [{transform_indices = @transform_0, window_bounds = array<i64: 1, 8, 128>}, {transform_indices = @transform_1, window_bounds = array<i64: 1, 1, 8>}, {pipeline_mode = #tpu.pipeline_mode<synchronous>, transform_indices = @transform_2, window_bounds = array<i64: 1, 128>}, {pipeline_mode = #tpu.pipeline_mode<synchronous>, transform_indices = @transform_3, window_bounds = array<i64: 1, 128>}, {transform_indices = @transform_4, window_bounds = array<i64: 1, 128, 768>}, {transform_indices = @transform_5, window_bounds = array<i64: 1, 1, 768>}, {transform_indices = @transform_6, window_bounds = array<i64: 1, 2, 128, 128>}, {transform_indices = @transform_7, window_bounds = array<i64: 1, 1, 128>}, {transform_indices = @transform_8, window_bounds = array<i64: 1, 1, 128>}, {transform_indices = @transform_9, window_bounds = array<i64: 1, 1, 128>}, {transform_indices = @transform_10, window_bounds = array<i64: 1, 128, 256>}, {transform_indices = @transform_11, window_bounds = array<i64: 1, 1, 256>}, {transform_indices = @transform_12, window_bounds = array<i64: 1, 256, 128>}, {transform_indices = @transform_13, window_bounds = array<i64: 1, 1, 128>}, {transform_indices = @transform_14, window_bounds = array<i64: 1, 1, 128>}, {transform_indices = @transform_15, window_bounds = array<i64: 1, 1, 128>}, {pipeline_mode = #tpu.pipeline_mode<synchronous>, transform_indices = @transform_16, window_bounds = array<i64: 128, 128>}, {pipeline_mode = #tpu.pipeline_mode<synchronous>, transform_indices = @transform_17, window_bounds = array<i64: 1, 128>}, {pipeline_mode = #tpu.pipeline_mode<synchronous>, transform_indices = @transform_18, window_bounds = array<i64: 128, 128>}, {pipeline_mode = #tpu.pipeline_mode<synchronous>, transform_indices = @transform_19, window_bounds = array<i64: 1, 128>}, {pipeline_mode = #tpu.pipeline_mode<synchronous>, transform_indices = @transform_20, window_bounds = array<i64: 128, 128>}, {pipeline_mode = #tpu.pipeline_mode<synchronous>, transform_indices = @transform_21, window_bounds = array<i64: 1, 128>}, {pipeline_mode = #tpu.pipeline_mode<synchronous>, transform_indices = @transform_22, window_bounds = array<i64: 128, 128>}, {pipeline_mode = #tpu.pipeline_mode<synchronous>, transform_indices = @transform_23, window_bounds = array<i64: 1, 128>}, {transform_indices = @transform_24, window_bounds = array<i64: 1, 8, 128>}]} {
    %c0_i32 = arith.constant 0 : i32
    %0 = arith.cmpi eq, %arg1, %c0_i32 : i32
    %1 = arith.extui %0 : i1 to i32
    %c0_i32_0 = arith.constant 0 : i32
    %2 = arith.cmpi ne, %1, %c0_i32_0 : i32
    scf.if %2 {
      %c0_79 = arith.constant 0 : index
      %c0_80 = arith.constant 0 : index
      %c0_81 = arith.constant 0 : index
      %156 = vector.load %arg2[%c0_79, %c0_80, %c0_81] : memref<1x8x128xf32, #tpu.memory_space<vmem>>, vector<1x8x128xf32>
      %157 = vector.shape_cast %156 : vector<1x8x128xf32> to vector<8x128xf32>
      %c0_82 = arith.constant 0 : index
      %c0_83 = arith.constant 0 : index
      %158 = vector.load %arg4[%c0_82, %c0_83] : memref<1x128xf32, #tpu.memory_space<vmem>>, vector<1x128xf32>
      %c0_84 = arith.constant 0 : index
      %c0_85 = arith.constant 0 : index
      %159 = vector.load %arg5[%c0_84, %c0_85] : memref<1x128xf32, #tpu.memory_space<vmem>>, vector<1x128xf32>
      %cst_86 = arith.constant dense<0.000000e+00> : vector<8xf32>
      %160 = vector.multi_reduction <add>, %157, %cst_86 [1] : vector<8x128xf32> to vector<8xf32>
      %161 = vector.shape_cast %160 : vector<8xf32> to vector<8x1xf32>
      %cst_87 = arith.constant 1.280000e+02 : f32
      %162 = vector.broadcast %cst_87 : f32 to vector<8x1xf32>
      %163 = arith.divf %161, %162 : vector<8x1xf32>
      %164 = vector.broadcast %163 : vector<8x1xf32> to vector<8x128xf32>
      %165 = arith.subf %157, %164 : vector<8x128xf32>
      %166 = arith.mulf %165, %165 : vector<8x128xf32>
      %cst_88 = arith.constant dense<0.000000e+00> : vector<8xf32>
      %167 = vector.multi_reduction <add>, %166, %cst_88 [1] : vector<8x128xf32> to vector<8xf32>
      %168 = vector.shape_cast %167 : vector<8xf32> to vector<8x1xf32>
      %cst_89 = arith.constant 1.280000e+02 : f32
      %169 = vector.broadcast %cst_89 : f32 to vector<8x1xf32>
      %170 = arith.divf %168, %169 : vector<8x1xf32>
      %171 = vector.broadcast %163 : vector<8x1xf32> to vector<8x128xf32>
      %172 = arith.subf %157, %171 : vector<8x128xf32>
      %cst_90 = arith.constant 9.99999996E-13 : f32
      %173 = vector.broadcast %cst_90 : f32 to vector<8x1xf32>
      %174 = arith.addf %170, %173 : vector<8x1xf32>
      %175 = math.rsqrt %174 : vector<8x1xf32>
      %176 = vector.broadcast %175 : vector<8x1xf32> to vector<8x128xf32>
      %177 = arith.mulf %172, %176 : vector<8x128xf32>
      %178 = vector.broadcast %158 : vector<1x128xf32> to vector<8x128xf32>
      %179 = arith.mulf %177, %178 : vector<8x128xf32>
      %180 = vector.broadcast %159 : vector<1x128xf32> to vector<8x128xf32>
      %181 = arith.addf %179, %180 : vector<8x128xf32>
      %c0_91 = arith.constant 0 : index
      %c0_92 = arith.constant 0 : index
      %182 = vector.load %arg27[%c0_91, %c0_92] : memref<8x128xf32, #tpu.memory_space<vmem>>, vector<8x128xf32>
      tpu.vector_store %arg27[%c0_91, %c0_92], %181 {strides = array<i32>} : memref<8x128xf32, #tpu.memory_space<vmem>>, vector<8x128xf32>,
    } else {
    }
    %c0 = arith.constant 0 : index
    %c0_1 = arith.constant 0 : index
    %3 = vector.load %arg27[%c0, %c0_1] : memref<8x128xf32, #tpu.memory_space<vmem>>, vector<8x128xf32>
    %4 = arith.truncf %3 : vector<8x128xf32> to vector<8x128xbf16>
    %c0_2 = arith.constant 0 : index
    %c0_3 = arith.constant 0 : index
    %c0_4 = arith.constant 0 : index
    %5 = vector.load %arg6[%c0_2, %c0_3, %c0_4] : memref<1x128x768xbf16, #tpu.memory_space<vmem>>, vector<1x128x768xbf16>
    %6 = vector.shape_cast %5 : vector<1x128x768xbf16> to vector<128x768xbf16>
    %cst = arith.constant dense<0.000000e+00> : vector<8x768xf32>
    %7 = tpu.matmul %4, %6, %cst {dimension_numbers = #tpu.dot_dimension_numbers<[1], [0], [0], [1], [0, 0, 1, 1], [], []>} : vector<8x128xbf16>, vector<128x768xbf16>, vector<8x768xf32> -> vector<8x768xf32>
    %c0_5 = arith.constant 0 : index
    %c0_6 = arith.constant 0 : index
    %c0_7 = arith.constant 0 : index
    %8 = vector.load %arg7[%c0_5, %c0_6, %c0_7] : memref<1x1x768xf32, #tpu.memory_space<vmem>>, vector<1x1x768xf32>
    %9 = vector.shape_cast %8 : vector<1x1x768xf32> to vector<1x768xf32>
    %10 = vector.broadcast %9 : vector<1x768xf32> to vector<8x768xf32>
    %11 = arith.addf %7, %10 : vector<8x768xf32>
    %c0_8 = arith.constant 0 : index
    %c0_9 = arith.constant 0 : index
    %c0_10 = arith.constant 0 : index
    %12 = vector.load %arg3[%c0_8, %c0_9, %c0_10] : memref<1x1x8xf32, #tpu.memory_space<vmem>>, vector<1x1x8xf32>
    %13 = vector.shape_cast %12 : vector<1x1x8xf32> to vector<1x8xf32>
    %14 = vector.shape_cast %13 : vector<1x8xf32> to vector<1x8xf32>
    %15 = vector.broadcast %14 : vector<1x8xf32> to vector<8x8xf32>
    %cst_11 = arith.constant 0.000000e+00 : f32
    %16 = vector.broadcast %cst_11 : f32 to vector<8x128xf32>
    %17 = vector.extract_strided_slice %11 {offsets = [0, 0], sizes = [8, 128], strides = [1, 1]} : vector<8x768xf32> to vector<8x128xf32>
    %18 = vector.extract_strided_slice %11 {offsets = [0, 128], sizes = [8, 128], strides = [1, 1]} : vector<8x768xf32> to vector<8x128xf32>
    %19 = vector.extract_strided_slice %11 {offsets = [0, 256], sizes = [8, 128], strides = [1, 1]} : vector<8x768xf32> to vector<8x128xf32>
    %cst_12 = arith.constant dense<0.000000e+00> : vector<8x8xf32>
    %20 = tpu.matmul %17, %18, %cst_12 {dimension_numbers = #tpu.dot_dimension_numbers<[1], [1], [0], [0], [0, 0, 1, 0], [], []>} : vector<8x128xf32>, vector<8x128xf32>, vector<8x8xf32> -> vector<8x8xf32>
    %cst_13 = arith.constant 1.250000e-01 : f32
    %21 = vector.broadcast %cst_13 : f32 to vector<8x8xf32>
    %22 = arith.mulf %20, %21 : vector<8x8xf32>
    %23 = arith.addf %22, %15 : vector<8x8xf32>
    %cst_14 = arith.constant dense<0xFF800000> : vector<8xf32>
    %24 = vector.multi_reduction <maximumf>, %23, %cst_14 [1] : vector<8x8xf32> to vector<8xf32>
    %cst_15 = arith.constant 0xFF800000 : f32
    %25 = vector.broadcast %cst_15 : f32 to vector<8xf32>
    %26 = arith.maximumf %25, %24 : vector<8xf32>
    %27 = vector.shape_cast %26 : vector<8xf32> to vector<8x1xf32>
    %28 = vector.broadcast %27 : vector<8x1xf32> to vector<8x8xf32>
    %29 = arith.subf %23, %28 : vector<8x8xf32>
    %30 = math.exp %29 : vector<8x8xf32>
    %cst_16 = arith.constant dense<0.000000e+00> : vector<8xf32>
    %31 = vector.multi_reduction <add>, %30, %cst_16 [1] : vector<8x8xf32> to vector<8xf32>
    %32 = vector.shape_cast %31 : vector<8xf32> to vector<8x1xf32>
    %33 = vector.broadcast %32 : vector<8x1xf32> to vector<8x8xf32>
    %34 = arith.divf %30, %33 : vector<8x8xf32>
    %cst_17 = arith.constant dense<0.000000e+00> : vector<8x128xf32>
    %35 = tpu.matmul %34, %19, %cst_17 {dimension_numbers = #tpu.dot_dimension_numbers<[1], [0], [0], [1], [0, 0, 1, 1], [], []>} : vector<8x8xf32>, vector<8x128xf32>, vector<8x128xf32> -> vector<8x128xf32>
    %36 = arith.truncf %35 : vector<8x128xf32> to vector<8x128xbf16>
    %c0_18 = arith.constant 0 : index
    %c0_19 = arith.constant 0 : index
    %c0_20 = arith.constant 0 : index
    %c0_21 = arith.constant 0 : index
    %37 = vector.load %arg8[%c0_18, %c0_19, %c0_20, %c0_21] : memref<1x2x128x128xbf16, #tpu.memory_space<vmem>>, vector<1x1x128x128xbf16>
    %38 = vector.shape_cast %37 : vector<1x1x128x128xbf16> to vector<128x128xbf16>
    %cst_22 = arith.constant dense<0.000000e+00> : vector<8x128xf32>
    %39 = tpu.matmul %36, %38, %cst_22 {dimension_numbers = #tpu.dot_dimension_numbers<[1], [0], [0], [1], [0, 0, 1, 1], [], []>} : vector<8x128xbf16>, vector<128x128xbf16>, vector<8x128xf32> -> vector<8x128xf32>
    %40 = arith.addf %16, %39 : vector<8x128xf32>
    %41 = vector.extract_strided_slice %11 {offsets = [0, 384], sizes = [8, 128], strides = [1, 1]} : vector<8x768xf32> to vector<8x128xf32>
    %42 = vector.extract_strided_slice %11 {offsets = [0, 512], sizes = [8, 128], strides = [1, 1]} : vector<8x768xf32> to vector<8x128xf32>
    %43 = vector.extract_strided_slice %11 {offsets = [0, 640], sizes = [8, 128], strides = [1, 1]} : vector<8x768xf32> to vector<8x128xf32>
    %cst_23 = arith.constant dense<0.000000e+00> : vector<8x8xf32>
    %44 = tpu.matmul %41, %42, %cst_23 {dimension_numbers = #tpu.dot_dimension_numbers<[1], [1], [0], [0], [0, 0, 1, 0], [], []>} : vector<8x128xf32>, vector<8x128xf32>, vector<8x8xf32> -> vector<8x8xf32>
    %cst_24 = arith.constant 1.250000e-01 : f32
    %45 = vector.broadcast %cst_24 : f32 to vector<8x8xf32>
    %46 = arith.mulf %44, %45 : vector<8x8xf32>
    %47 = arith.addf %46, %15 : vector<8x8xf32>
    %cst_25 = arith.constant dense<0xFF800000> : vector<8xf32>
    %48 = vector.multi_reduction <maximumf>, %47, %cst_25 [1] : vector<8x8xf32> to vector<8xf32>
    %cst_26 = arith.constant 0xFF800000 : f32
    %49 = vector.broadcast %cst_26 : f32 to vector<8xf32>
    %50 = arith.maximumf %49, %48 : vector<8xf32>
    %51 = vector.shape_cast %50 : vector<8xf32> to vector<8x1xf32>
    %52 = vector.broadcast %51 : vector<8x1xf32> to vector<8x8xf32>
    %53 = arith.subf %47, %52 : vector<8x8xf32>
    %54 = math.exp %53 : vector<8x8xf32>
    %cst_27 = arith.constant dense<0.000000e+00> : vector<8xf32>
    %55 = vector.multi_reduction <add>, %54, %cst_27 [1] : vector<8x8xf32> to vector<8xf32>
    %56 = vector.shape_cast %55 : vector<8xf32> to vector<8x1xf32>
    %57 = vector.broadcast %56 : vector<8x1xf32> to vector<8x8xf32>
    %58 = arith.divf %54, %57 : vector<8x8xf32>
    %cst_28 = arith.constant dense<0.000000e+00> : vector<8x128xf32>
    %59 = tpu.matmul %58, %43, %cst_28 {dimension_numbers = #tpu.dot_dimension_numbers<[1], [0], [0], [1], [0, 0, 1, 1], [], []>} : vector<8x8xf32>, vector<8x128xf32>, vector<8x128xf32> -> vector<8x128xf32>
    %60 = arith.truncf %59 : vector<8x128xf32> to vector<8x128xbf16>
    %c0_29 = arith.constant 0 : index
    %c1 = arith.constant 1 : index
    %c0_30 = arith.constant 0 : index
    %c0_31 = arith.constant 0 : index
    %61 = vector.load %arg8[%c0_29, %c1, %c0_30, %c0_31] : memref<1x2x128x128xbf16, #tpu.memory_space<vmem>>, vector<1x1x128x128xbf16>
    %62 = vector.shape_cast %61 : vector<1x1x128x128xbf16> to vector<128x128xbf16>
    %cst_32 = arith.constant dense<0.000000e+00> : vector<8x128xf32>
    %63 = tpu.matmul %60, %62, %cst_32 {dimension_numbers = #tpu.dot_dimension_numbers<[1], [0], [0], [1], [0, 0, 1, 1], [], []>} : vector<8x128xbf16>, vector<128x128xbf16>, vector<8x128xf32> -> vector<8x128xf32>
    %64 = arith.addf %40, %63 : vector<8x128xf32>
    %c0_33 = arith.constant 0 : index
    %c0_34 = arith.constant 0 : index
    %c0_35 = arith.constant 0 : index
    %65 = vector.load %arg9[%c0_33, %c0_34, %c0_35] : memref<1x1x128xf32, #tpu.memory_space<vmem>>, vector<1x1x128xf32>
    %66 = vector.shape_cast %65 : vector<1x1x128xf32> to vector<1x128xf32>
    %67 = vector.broadcast %66 : vector<1x128xf32> to vector<8x128xf32>
    %68 = arith.addf %64, %67 : vector<8x128xf32>
    %69 = arith.addf %68, %3 : vector<8x128xf32>
    %c0_36 = arith.constant 0 : index
    %c0_37 = arith.constant 0 : index
    %c0_38 = arith.constant 0 : index
    %70 = vector.load %arg10[%c0_36, %c0_37, %c0_38] : memref<1x1x128xf32, #tpu.memory_space<vmem>>, vector<1x1x128xf32>
    %71 = vector.shape_cast %70 : vector<1x1x128xf32> to vector<1x128xf32>
    %c0_39 = arith.constant 0 : index
    %c0_40 = arith.constant 0 : index
    %c0_41 = arith.constant 0 : index
    %72 = vector.load %arg11[%c0_39, %c0_40, %c0_41] : memref<1x1x128xf32, #tpu.memory_space<vmem>>, vector<1x1x128xf32>
    %73 = vector.shape_cast %72 : vector<1x1x128xf32> to vector<1x128xf32>
    %cst_42 = arith.constant dense<0.000000e+00> : vector<8xf32>
    %74 = vector.multi_reduction <add>, %69, %cst_42 [1] : vector<8x128xf32> to vector<8xf32>
    %75 = vector.shape_cast %74 : vector<8xf32> to vector<8x1xf32>
    %cst_43 = arith.constant 1.280000e+02 : f32
    %76 = vector.broadcast %cst_43 : f32 to vector<8x1xf32>
    %77 = arith.divf %75, %76 : vector<8x1xf32>
    %78 = vector.broadcast %77 : vector<8x1xf32> to vector<8x128xf32>
    %79 = arith.subf %69, %78 : vector<8x128xf32>
    %80 = arith.mulf %79, %79 : vector<8x128xf32>
    %cst_44 = arith.constant dense<0.000000e+00> : vector<8xf32>
    %81 = vector.multi_reduction <add>, %80, %cst_44 [1] : vector<8x128xf32> to vector<8xf32>
    %82 = vector.shape_cast %81 : vector<8xf32> to vector<8x1xf32>
    %cst_45 = arith.constant 1.280000e+02 : f32
    %83 = vector.broadcast %cst_45 : f32 to vector<8x1xf32>
    %84 = arith.divf %82, %83 : vector<8x1xf32>
    %85 = vector.broadcast %77 : vector<8x1xf32> to vector<8x128xf32>
    %86 = arith.subf %69, %85 : vector<8x128xf32>
    %cst_46 = arith.constant 9.99999996E-13 : f32
    %87 = vector.broadcast %cst_46 : f32 to vector<8x1xf32>
    %88 = arith.addf %84, %87 : vector<8x1xf32>
    %89 = math.rsqrt %88 : vector<8x1xf32>
    %90 = vector.broadcast %89 : vector<8x1xf32> to vector<8x128xf32>
    %91 = arith.mulf %86, %90 : vector<8x128xf32>
    %92 = vector.broadcast %71 : vector<1x128xf32> to vector<8x128xf32>
    %93 = arith.mulf %91, %92 : vector<8x128xf32>
    %94 = vector.broadcast %73 : vector<1x128xf32> to vector<8x128xf32>
    %95 = arith.addf %93, %94 : vector<8x128xf32>
    %96 = arith.truncf %95 : vector<8x128xf32> to vector<8x128xbf16>
    %c0_47 = arith.constant 0 : index
    %c0_48 = arith.constant 0 : index
    %c0_49 = arith.constant 0 : index
    %97 = vector.load %arg12[%c0_47, %c0_48, %c0_49] : memref<1x128x256xbf16, #tpu.memory_space<vmem>>, vector<1x128x256xbf16>
    %98 = vector.shape_cast %97 : vector<1x128x256xbf16> to vector<128x256xbf16>
    %cst_50 = arith.constant dense<0.000000e+00> : vector<8x256xf32>
    %99 = tpu.matmul %96, %98, %cst_50 {dimension_numbers = #tpu.dot_dimension_numbers<[1], [0], [0], [1], [0, 0, 1, 1], [], []>} : vector<8x128xbf16>, vector<128x256xbf16>, vector<8x256xf32> -> vector<8x256xf32>
    %c0_51 = arith.constant 0 : index
    %c0_52 = arith.constant 0 : index
    %c0_53 = arith.constant 0 : index
    %100 = vector.load %arg13[%c0_51, %c0_52, %c0_53] : memref<1x1x256xf32, #tpu.memory_space<vmem>>, vector<1x1x256xf32>
    %101 = vector.shape_cast %100 : vector<1x1x256xf32> to vector<1x256xf32>
    %102 = vector.broadcast %101 : vector<1x256xf32> to vector<8x256xf32>
    %103 = arith.addf %99, %102 : vector<8x256xf32>
    %104 = arith.mulf %103, %103 : vector<8x256xf32>
    %105 = arith.mulf %103, %104 : vector<8x256xf32>
    %cst_54 = arith.constant 4.471500e-02 : f32
    %106 = vector.broadcast %cst_54 : f32 to vector<8x256xf32>
    %107 = arith.mulf %106, %105 : vector<8x256xf32>
    %108 = arith.addf %103, %107 : vector<8x256xf32>
    %cst_55 = arith.constant 0.797884583 : f32
    %109 = vector.broadcast %cst_55 : f32 to vector<8x256xf32>
    %110 = arith.mulf %109, %108 : vector<8x256xf32>
    %111 = math.tanh %110 : vector<8x256xf32>
    %cst_56 = arith.constant 1.000000e+00 : f32
    %112 = vector.broadcast %cst_56 : f32 to vector<8x256xf32>
    %113 = arith.addf %112, %111 : vector<8x256xf32>
    %cst_57 = arith.constant 5.000000e-01 : f32
    %114 = vector.broadcast %cst_57 : f32 to vector<8x256xf32>
    %115 = arith.mulf %114, %113 : vector<8x256xf32>
    %116 = arith.mulf %103, %115 : vector<8x256xf32>
    %117 = arith.truncf %116 : vector<8x256xf32> to vector<8x256xbf16>
    %c0_58 = arith.constant 0 : index
    %c0_59 = arith.constant 0 : index
    %c0_60 = arith.constant 0 : index
    %118 = vector.load %arg14[%c0_58, %c0_59, %c0_60] : memref<1x256x128xbf16, #tpu.memory_space<vmem>>, vector<1x256x128xbf16>
    %119 = vector.shape_cast %118 : vector<1x256x128xbf16> to vector<256x128xbf16>
    %cst_61 = arith.constant dense<0.000000e+00> : vector<8x128xf32>
    %120 = tpu.matmul %117, %119, %cst_61 {dimension_numbers = #tpu.dot_dimension_numbers<[1], [0], [0], [1], [0, 0, 1, 1], [], []>} : vector<8x256xbf16>, vector<256x128xbf16>, vector<8x128xf32> -> vector<8x128xf32>
    %c0_62 = arith.constant 0 : index
    %c0_63 = arith.constant 0 : index
    %c0_64 = arith.constant 0 : index
    %121 = vector.load %arg15[%c0_62, %c0_63, %c0_64] : memref<1x1x128xf32, #tpu.memory_space<vmem>>, vector<1x1x128xf32>
    %122 = vector.shape_cast %121 : vector<1x1x128xf32> to vector<1x128xf32>
    %123 = vector.broadcast %122 : vector<1x128xf32> to vector<8x128xf32>
    %124 = arith.addf %120, %123 : vector<8x128xf32>
    %125 = arith.addf %124, %95 : vector<8x128xf32>
    %c0_65 = arith.constant 0 : index
    %c0_66 = arith.constant 0 : index
    %c0_67 = arith.constant 0 : index
    %126 = vector.load %arg16[%c0_65, %c0_66, %c0_67] : memref<1x1x128xf32, #tpu.memory_space<vmem>>, vector<1x1x128xf32>
    %127 = vector.shape_cast %126 : vector<1x1x128xf32> to vector<1x128xf32>
    %c0_68 = arith.constant 0 : index
    %c0_69 = arith.constant 0 : index
    %c0_70 = arith.constant 0 : index
    %128 = vector.load %arg17[%c0_68, %c0_69, %c0_70] : memref<1x1x128xf32, #tpu.memory_space<vmem>>, vector<1x1x128xf32>
    %129 = vector.shape_cast %128 : vector<1x1x128xf32> to vector<1x128xf32>
    %cst_71 = arith.constant dense<0.000000e+00> : vector<8xf32>
    %130 = vector.multi_reduction <add>, %125, %cst_71 [1] : vector<8x128xf32> to vector<8xf32>
    %131 = vector.shape_cast %130 : vector<8xf32> to vector<8x1xf32>
    %cst_72 = arith.constant 1.280000e+02 : f32
    %132 = vector.broadcast %cst_72 : f32 to vector<8x1xf32>
    %133 = arith.divf %131, %132 : vector<8x1xf32>
    %134 = vector.broadcast %133 : vector<8x1xf32> to vector<8x128xf32>
    %135 = arith.subf %125, %134 : vector<8x128xf32>
    %136 = arith.mulf %135, %135 : vector<8x128xf32>
    %cst_73 = arith.constant dense<0.000000e+00> : vector<8xf32>
    %137 = vector.multi_reduction <add>, %136, %cst_73 [1] : vector<8x128xf32> to vector<8xf32>
    %138 = vector.shape_cast %137 : vector<8xf32> to vector<8x1xf32>
    %cst_74 = arith.constant 1.280000e+02 : f32
    %139 = vector.broadcast %cst_74 : f32 to vector<8x1xf32>
    %140 = arith.divf %138, %139 : vector<8x1xf32>
    %141 = vector.broadcast %133 : vector<8x1xf32> to vector<8x128xf32>
    %142 = arith.subf %125, %141 : vector<8x128xf32>
    %cst_75 = arith.constant 9.99999996E-13 : f32
    %143 = vector.broadcast %cst_75 : f32 to vector<8x1xf32>
    %144 = arith.addf %140, %143 : vector<8x1xf32>
    %145 = math.rsqrt %144 : vector<8x1xf32>
    %146 = vector.broadcast %145 : vector<8x1xf32> to vector<8x128xf32>
    %147 = arith.mulf %142, %146 : vector<8x128xf32>
    %148 = vector.broadcast %127 : vector<1x128xf32> to vector<8x128xf32>
    %149 = arith.mulf %147, %148 : vector<8x128xf32>
    %150 = vector.broadcast %129 : vector<1x128xf32> to vector<8x128xf32>
    %151 = arith.addf %149, %150 : vector<8x128xf32>
    %c0_76 = arith.constant 0 : index
    %c0_77 = arith.constant 0 : index
    %152 = vector.load %arg27[%c0_76, %c0_77] : memref<8x128xf32, #tpu.memory_space<vmem>>, vector<8x128xf32>
    tpu.vector_store %arg27[%c0_76, %c0_77], %151 {strides = array<i32>} : memref<8x128xf32, #tpu.memory_space<vmem>>, vector<8x128xf32>,
    %c1_i32 = arith.constant 1 : i32
    %153 = arith.cmpi eq, %arg1, %c1_i32 : i32
    %154 = arith.extui %153 : i1 to i32
    %c0_i32_78 = arith.constant 0 : i32
    %155 = arith.cmpi ne, %154, %c0_i32_78 : i32
    scf.if %155 {
      %156 = vector.extract_strided_slice %151 {offsets = [0, 0], sizes = [1, 128], strides = [1, 1]} : vector<8x128xf32> to vector<1x128xf32>
      %157 = arith.truncf %156 : vector<1x128xf32> to vector<1x128xbf16>
      %c0_79 = arith.constant 0 : index
      %c0_80 = arith.constant 0 : index
      %158 = vector.load %arg18[%c0_79, %c0_80] : memref<128x128xbf16, #tpu.memory_space<vmem>>, vector<128x128xbf16>
      %cst_81 = arith.constant dense<0.000000e+00> : vector<1x128xf32>
      %159 = tpu.matmul %157, %158, %cst_81 {dimension_numbers = #tpu.dot_dimension_numbers<[1], [0], [0], [1], [0, 0, 1, 1], [], []>} : vector<1x128xbf16>, vector<128x128xbf16>, vector<1x128xf32> -> vector<1x128xf32>
      %c0_82 = arith.constant 0 : index
      %c0_83 = arith.constant 0 : index
      %160 = vector.load %arg19[%c0_82, %c0_83] : memref<1x128xf32, #tpu.memory_space<vmem>>, vector<1x128xf32>
      %161 = arith.addf %159, %160 : vector<1x128xf32>
      %162 = math.tanh %161 : vector<1x128xf32>
      %163 = arith.truncf %162 : vector<1x128xf32> to vector<1x128xbf16>
      %c0_84 = arith.constant 0 : index
      %c0_85 = arith.constant 0 : index
      %164 = vector.load %arg20[%c0_84, %c0_85] : memref<128x128xbf16, #tpu.memory_space<vmem>>, vector<128x128xbf16>
      %cst_86 = arith.constant dense<0.000000e+00> : vector<1x128xf32>
      %165 = tpu.matmul %163, %164, %cst_86 {dimension_numbers = #tpu.dot_dimension_numbers<[1], [0], [0], [1], [0, 0, 1, 1], [], []>} : vector<1x128xbf16>, vector<128x128xbf16>, vector<1x128xf32> -> vector<1x128xf32>
      %c0_87 = arith.constant 0 : index
      %c0_88 = arith.constant 0 : index
      %166 = vector.load %arg21[%c0_87, %c0_88] : memref<1x128xf32, #tpu.memory_space<vmem>>, vector<1x128xf32>
      %167 = arith.addf %165, %166 : vector<1x128xf32>
      %cst_89 = arith.constant 0.000000e+00 : f32
      %168 = vector.broadcast %cst_89 : f32 to vector<1x128xf32>
      %169 = arith.cmpf oge, %167, %168 : vector<1x128xf32>
      %cst_90 = arith.constant 0.00999999977 : f32
      %170 = vector.broadcast %cst_90 : f32 to vector<1x128xf32>
      %171 = arith.mulf %170, %167 : vector<1x128xf32>
      %172 = arith.select %169, %167, %171 : vector<1x128xi1>, vector<1x128xf32>
      %173 = arith.truncf %172 : vector<1x128xf32> to vector<1x128xbf16>
      %c0_91 = arith.constant 0 : index
      %c0_92 = arith.constant 0 : index
      %174 = vector.load %arg22[%c0_91, %c0_92] : memref<128x128xbf16, #tpu.memory_space<vmem>>, vector<128x128xbf16>
      %cst_93 = arith.constant dense<0.000000e+00> : vector<1x128xf32>
      %175 = tpu.matmul %173, %174, %cst_93 {dimension_numbers = #tpu.dot_dimension_numbers<[1], [0], [0], [1], [0, 0, 1, 1], [], []>} : vector<1x128xbf16>, vector<128x128xbf16>, vector<1x128xf32> -> vector<1x128xf32>
      %c0_94 = arith.constant 0 : index
      %c0_95 = arith.constant 0 : index
      %176 = vector.load %arg23[%c0_94, %c0_95] : memref<1x128xf32, #tpu.memory_space<vmem>>, vector<1x128xf32>
      %177 = arith.addf %175, %176 : vector<1x128xf32>
      %cst_96 = arith.constant 0.000000e+00 : f32
      %178 = vector.broadcast %cst_96 : f32 to vector<1x128xf32>
      %179 = arith.cmpf oge, %177, %178 : vector<1x128xf32>
      %cst_97 = arith.constant 0.00999999977 : f32
      %180 = vector.broadcast %cst_97 : f32 to vector<1x128xf32>
      %181 = arith.mulf %180, %177 : vector<1x128xf32>
      %182 = arith.select %179, %177, %181 : vector<1x128xi1>, vector<1x128xf32>
      %183 = arith.truncf %182 : vector<1x128xf32> to vector<1x128xbf16>
      %c0_98 = arith.constant 0 : index
      %c0_99 = arith.constant 0 : index
      %184 = vector.load %arg24[%c0_98, %c0_99] : memref<128x128xbf16, #tpu.memory_space<vmem>>, vector<128x128xbf16>
      %cst_100 = arith.constant dense<0.000000e+00> : vector<1x128xf32>
      %185 = tpu.matmul %183, %184, %cst_100 {dimension_numbers = #tpu.dot_dimension_numbers<[1], [0], [0], [1], [0, 0, 1, 1], [], []>} : vector<1x128xbf16>, vector<128x128xbf16>, vector<1x128xf32> -> vector<1x128xf32>
      %c0_101 = arith.constant 0 : index
      %c0_102 = arith.constant 0 : index
      %186 = vector.load %arg25[%c0_101, %c0_102] : memref<1x128xf32, #tpu.memory_space<vmem>>, vector<1x128xf32>
      %187 = arith.addf %185, %186 : vector<1x128xf32>
      %cst_103 = arith.constant 0.000000e+00 : f32
      %188 = vector.broadcast %cst_103 : f32 to vector<1x128xf32>
      %189 = arith.cmpf oge, %187, %188 : vector<1x128xf32>
      %cst_104 = arith.constant 0.00999999977 : f32
      %190 = vector.broadcast %cst_104 : f32 to vector<1x128xf32>
      %191 = arith.mulf %190, %187 : vector<1x128xf32>
      %192 = arith.select %189, %187, %191 : vector<1x128xi1>, vector<1x128xf32>
      %193 = vector.shape_cast %192 : vector<1x128xf32> to vector<1x128xf32>
      %194 = vector.broadcast %193 : vector<1x128xf32> to vector<8x128xf32>
      %c0_105 = arith.constant 0 : index
      %c0_106 = arith.constant 0 : index
      %c0_107 = arith.constant 0 : index
      %195 = vector.load %arg26[%c0_105, %c0_106, %c0_107] : memref<1x8x128xf32, #tpu.memory_space<vmem>>, vector<1x8x128xf32>
      %196 = vector.shape_cast %195 : vector<1x8x128xf32> to vector<8x128xf32>
      %197 = vector.shape_cast %194 : vector<8x128xf32> to vector<1x8x128xf32>
      tpu.vector_store %arg26[%c0_105, %c0_106, %c0_107], %197 {strides = array<i32>} : memref<1x8x128xf32, #tpu.memory_space<vmem>>, vector<1x8x128xf32>,
    } else {
    }
    return
  }
  func.func @transform_0(%arg0: i32, %arg1: i32) -> (i32, i32, i32) {
    %c0_i32 = arith.constant 0 : i32
    %c0_i32_0 = arith.constant 0 : i32
    %c0_i32_1 = arith.constant 0 : i32
    return %arg0, %c0_i32, %c0_i32_0 : i32, i32, i32
  }
  func.func @transform_1(%arg0: i32, %arg1: i32) -> (i32, i32, i32) {
    %c0_i32 = arith.constant 0 : i32
    %c0_i32_0 = arith.constant 0 : i32
    %c0_i32_1 = arith.constant 0 : i32
    return %arg0, %c0_i32, %c0_i32_0 : i32, i32, i32
  }
  func.func @transform_2(%arg0: i32, %arg1: i32) -> (i32, i32) {
    %c0_i32 = arith.constant 0 : i32
    %c0_i32_0 = arith.constant 0 : i32
    %c0_i32_1 = arith.constant 0 : i32
    return %c0_i32, %c0_i32_0 : i32, i32
  }
  func.func @transform_3(%arg0: i32, %arg1: i32) -> (i32, i32) {
    %c0_i32 = arith.constant 0 : i32
    %c0_i32_0 = arith.constant 0 : i32
    %c0_i32_1 = arith.constant 0 : i32
    return %c0_i32, %c0_i32_0 : i32, i32
  }
  func.func @transform_4(%arg0: i32, %arg1: i32) -> (i32, i32, i32) {
    %c0_i32 = arith.constant 0 : i32
    %c0_i32_0 = arith.constant 0 : i32
    %c0_i32_1 = arith.constant 0 : i32
    return %arg1, %c0_i32, %c0_i32_0 : i32, i32, i32
  }
  func.func @transform_5(%arg0: i32, %arg1: i32) -> (i32, i32, i32) {
    %c0_i32 = arith.constant 0 : i32
    %c0_i32_0 = arith.constant 0 : i32
    %c0_i32_1 = arith.constant 0 : i32
    return %arg1, %c0_i32, %c0_i32_0 : i32, i32, i32
  }
  func.func @transform_6(%arg0: i32, %arg1: i32) -> (i32, i32, i32, i32) {
    %c0_i32 = arith.constant 0 : i32
    %c0_i32_0 = arith.constant 0 : i32
    %c0_i32_1 = arith.constant 0 : i32
    %c0_i32_2 = arith.constant 0 : i32
    return %arg1, %c0_i32, %c0_i32_0, %c0_i32_1 : i32, i32, i32, i32
  }
  func.func @transform_7(%arg0: i32, %arg1: i32) -> (i32, i32, i32) {
    %c0_i32 = arith.constant 0 : i32
    %c0_i32_0 = arith.constant 0 : i32
    %c0_i32_1 = arith.constant 0 : i32
    return %arg1, %c0_i32, %c0_i32_0 : i32, i32, i32
  }
  func.func @transform_8(%arg0: i32, %arg1: i32) -> (i32, i32, i32) {
    %c0_i32 = arith.constant 0 : i32
    %c0_i32_0 = arith.constant 0 : i32
    %c0_i32_1 = arith.constant 0 : i32
    return %arg1, %c0_i32, %c0_i32_0 : i32, i32, i32
  }
  func.func @transform_9(%arg0: i32, %arg1: i32) -> (i32, i32, i32) {
    %c0_i32 = arith.constant 0 : i32
    %c0_i32_0 = arith.constant 0 : i32
    %c0_i32_1 = arith.constant 0 : i32
    return %arg1, %c0_i32, %c0_i32_0 : i32, i32, i32
  }
  func.func @transform_10(%arg0: i32, %arg1: i32) -> (i32, i32, i32) {
    %c0_i32 = arith.constant 0 : i32
    %c0_i32_0 = arith.constant 0 : i32
    %c0_i32_1 = arith.constant 0 : i32
    return %arg1, %c0_i32, %c0_i32_0 : i32, i32, i32
  }
  func.func @transform_11(%arg0: i32, %arg1: i32) -> (i32, i32, i32) {
    %c0_i32 = arith.constant 0 : i32
    %c0_i32_0 = arith.constant 0 : i32
    %c0_i32_1 = arith.constant 0 : i32
    return %arg1, %c0_i32, %c0_i32_0 : i32, i32, i32
  }
  func.func @transform_12(%arg0: i32, %arg1: i32) -> (i32, i32, i32) {
    %c0_i32 = arith.constant 0 : i32
    %c0_i32_0 = arith.constant 0 : i32
    %c0_i32_1 = arith.constant 0 : i32
    return %arg1, %c0_i32, %c0_i32_0 : i32, i32, i32
  }
  func.func @transform_13(%arg0: i32, %arg1: i32) -> (i32, i32, i32) {
    %c0_i32 = arith.constant 0 : i32
    %c0_i32_0 = arith.constant 0 : i32
    %c0_i32_1 = arith.constant 0 : i32
    return %arg1, %c0_i32, %c0_i32_0 : i32, i32, i32
  }
  func.func @transform_14(%arg0: i32, %arg1: i32) -> (i32, i32, i32) {
    %c0_i32 = arith.constant 0 : i32
    %c0_i32_0 = arith.constant 0 : i32
    %c0_i32_1 = arith.constant 0 : i32
    return %arg1, %c0_i32, %c0_i32_0 : i32, i32, i32
  }
  func.func @transform_15(%arg0: i32, %arg1: i32) -> (i32, i32, i32) {
    %c0_i32 = arith.constant 0 : i32
    %c0_i32_0 = arith.constant 0 : i32
    %c0_i32_1 = arith.constant 0 : i32
    return %arg1, %c0_i32, %c0_i32_0 : i32, i32, i32
  }
  func.func @transform_16(%arg0: i32, %arg1: i32) -> (i32, i32) {
    %c0_i32 = arith.constant 0 : i32
    %c0_i32_0 = arith.constant 0 : i32
    %c0_i32_1 = arith.constant 0 : i32
    return %c0_i32, %c0_i32_0 : i32, i32
  }
  func.func @transform_17(%arg0: i32, %arg1: i32) -> (i32, i32) {
    %c0_i32 = arith.constant 0 : i32
    %c0_i32_0 = arith.constant 0 : i32
    %c0_i32_1 = arith.constant 0 : i32
    return %c0_i32, %c0_i32_0 : i32, i32
  }
  func.func @transform_18(%arg0: i32, %arg1: i32) -> (i32, i32) {
    %c0_i32 = arith.constant 0 : i32
    %c0_i32_0 = arith.constant 0 : i32
    %c0_i32_1 = arith.constant 0 : i32
    return %c0_i32, %c0_i32_0 : i32, i32
  }
  func.func @transform_19(%arg0: i32, %arg1: i32) -> (i32, i32) {
    %c0_i32 = arith.constant 0 : i32
    %c0_i32_0 = arith.constant 0 : i32
    %c0_i32_1 = arith.constant 0 : i32
    return %c0_i32, %c0_i32_0 : i32, i32
  }
  func.func @transform_20(%arg0: i32, %arg1: i32) -> (i32, i32) {
    %c0_i32 = arith.constant 0 : i32
    %c0_i32_0 = arith.constant 0 : i32
    %c0_i32_1 = arith.constant 0 : i32
    return %c0_i32, %c0_i32_0 : i32, i32
  }
  func.func @transform_21(%arg0: i32, %arg1: i32) -> (i32, i32) {
    %c0_i32 = arith.constant 0 : i32
    %c0_i32_0 = arith.constant 0 : i32
    %c0_i32_1 = arith.constant 0 : i32
    return %c0_i32, %c0_i32_0 : i32, i32
  }
  func.func @transform_22(%arg0: i32, %arg1: i32) -> (i32, i32) {
    %c0_i32 = arith.constant 0 : i32
    %c0_i32_0 = arith.constant 0 : i32
    %c0_i32_1 = arith.constant 0 : i32
    return %c0_i32, %c0_i32_0 : i32, i32
  }
  func.func @transform_23(%arg0: i32, %arg1: i32) -> (i32, i32) {
    %c0_i32 = arith.constant 0 : i32
    %c0_i32_0 = arith.constant 0 : i32
    %c0_i32_1 = arith.constant 0 : i32
    return %c0_i32, %c0_i32_0 : i32, i32
  }
  func.func @transform_24(%arg0: i32, %arg1: i32) -> (i32, i32, i32) {
    %c0_i32 = arith.constant 0 : i32
    %c0_i32_0 = arith.constant 0 : i32
    %c0_i32_1 = arith.constant 0 : i32
    return %arg0, %c0_i32, %c0_i32_0 : i32, i32, i32
  }
}

</mosaic_0001>

<bundles_post_ra>
// kernel: tpu_custom_call.1
= control target key start
LH: loop header
LB: loop body
LE: loop exit
PB: predicated region body
PF: predicated region fallthrough
CT: control target
= control target key end

     0   :  { %s5384_s0 = inlined_call_operand.hbm [shape: f32[2,8,128], index: 0, kind: input, shape index: {}]   ;;  %s5385_s1 = inlined_call_operand.hbm [shape: f32[2,1,8], index: 1, kind: input, shape index: {}]   ;;  %s5386_s2 = inlined_call_operand.hbm [shape: f32[1,128], index: 2, kind: input, shape index: {}]   ;;  %s5387_s3 = inlined_call_operand.hbm [shape: f32[1,128], index: 3, kind: input, shape index: {}]   ;;  %s5388_s4 = inlined_call_operand.hbm [shape: bf16[2,128,768], index: 4, kind: input, shape index: {}]   ;;  %s5389_s5 = inlined_call_operand.hbm [shape: f32[2,1,768], index: 5, kind: input, shape index: {}]   ;;  %s5390_s6 = inlined_call_operand.hbm [shape: bf16[2,2,128,128], index: 6, kind: input, shape index: {}]   ;;  %s5391_s7 = inlined_call_operand.vmem [shape: f32[2,1,128], index: 7, kind: input, shape index: {}]   ;;  %s5392_s8 = inlined_call_operand.hbm [shape: f32[2,1,128], index: 8, kind: input, shape index: {}]   ;;  %s5393_s9 = inlined_call_operand.vmem [shape: f32[2,1,128], index: 9, kind: input, shape index: {}]   ;;  %s5394_s10 = inlined_call_operand.hbm [shape: bf16[2,128,256], index: 10, kind: input, shape index: {}]   ;;  %s5395_s11 = inlined_call_operand.vmem [shape: f32[2,1,256], index: 11, kind: input, shape index: {}]   ;;  %s5396_s12 = inlined_call_operand.hbm [shape: bf16[2,256,128], index: 12, kind: input, shape index: {}]   ;;  %s5397_s13 = inlined_call_operand.vmem [shape: f32[2,1,128], index: 13, kind: input, shape index: {}]   ;;  %s5398_s14 = inlined_call_operand.vmem [shape: f32[2,1,128], index: 14, kind: input, shape index: {}]   ;;  %s5399_s15 = inlined_call_operand.vmem [shape: f32[2,1,128], index: 15, kind: input, shape index: {}]   ;;  %s5400_s16 = inlined_call_operand.hbm [shape: bf16[128,128], index: 16, kind: input, shape index: {}]   ;;  %s5401_s17 = inlined_call_operand.vmem [shape: f32[1,128], index: 17, kind: input, shape index: {}]   ;;  %s5402_s18 = inlined_call_operand.hbm [shape: bf16[128,128], index: 18, kind: input, shape index: {}]   ;;  %s5403_s19 = inlined_call_operand.vmem [shape: f32[1,128], index: 19, kind: input, shape index: {}]   ;;  %s5404_s20 = inlined_call_operand.hbm [shape: bf16[128,128], index: 20, kind: input, shape index: {}]   ;;  %s5405_s21 = inlined_call_operand.vmem [shape: f32[1,128], index: 21, kind: input, shape index: {}]   ;;  %s5406_s22 = inlined_call_operand.hbm [shape: bf16[128,128], index: 22, kind: input, shape index: {}]   ;;  %s5407_s23 = inlined_call_operand.vmem [shape: f32[1,128], index: 23, kind: input, shape index: {}]   ;;  %s5408_s24 = inlined_call_operand.hbm [shape: f32[2,8,128], index: 24, kind: output, shape index: {}]  }
   0x1   :  { %5433 = sst [smem:[#allocation56_spill]] %s5384_s0 }
   0x2   :  { %5434 = sst [smem:[#allocation57_spill]] %s5385_s1 }
   0x3   :  { %5435 = sst [smem:[#allocation58_spill]] %s5386_s2 }
   0x4   :  { %5436 = sst [smem:[#allocation59_spill]] %s5387_s3 }
   0x5   :  { %5437 = sst [smem:[#allocation60_spill]] %s5388_s4 }
   0x6   :  { %5438 = sst [smem:[#allocation61_spill]] %s5389_s5 }
   0x7   :  { %5439 = sst [smem:[#allocation62_spill]] %s5390_s6 }
   0x8   :  { %5440 = sst [smem:[#allocation63_spill]] %s5391_s7 }
   0x9   :  { %5441 = sst [smem:[#allocation64_spill]] %s5392_s8 }
   0xa   :  { %5442 = sst [smem:[#allocation65_spill]] %s5393_s9 }
   0xb   :  { %5443 = sst [smem:[#allocation66_spill]] %s5394_s10 }
   0xc   :  { %5444 = sst [smem:[#allocation67_spill]] %s5395_s11 }
   0xd   :  { %5445 = sst [smem:[#allocation68_spill]] %s5396_s12 }
   0xe   :  { %5446 = sst [smem:[#allocation69_spill]] %s5397_s13 }
   0xf   :  { %5447 = sst [smem:[#allocation70_spill]] %s5398_s14 }
  0x10   :  { %5448 = sst [smem:[#allocation71_spill]] %s5399_s15 }
  0x11   :  { %5449 = sst [smem:[#allocation72_spill]] %s5400_s16 }
  0x12   :  { %5450 = sst [smem:[#allocation73_spill]] %s5401_s17 }
  0x13   :  { %5451 = sst [smem:[#allocation74_spill]] %s5402_s18 }
  0x14   :  { %5452 = sst [smem:[#allocation75_spill]] %s5403_s19 }
  0x15   :  { %5453 = sst [smem:[#allocation76_spill]] %s5404_s20 }
  0x16   :  { %5454 = sst [smem:[#allocation77_spill]] %s5405_s21 }
  0x17   :  { %5455 = sst [smem:[#allocation78_spill]] %s5406_s22 }
  0x18   :  { %5456 = sst [smem:[#allocation79_spill]] %s5407_s23 }
  0x19   :  { %5457 = sst [smem:[#allocation80_spill]] %s5408_s24 }
  0x1a   :  { %29 = vsyncpa [#allocation4], 0 }
  0x1b   :  { %31 = vsyncpa [#allocation4 + $0x1], 0 }
  0x1c   :  { %32 = vsyncpa [#allocation7], 0 }
  0x1d   :  { %34 = vsyncpa [#allocation7 + $0x1], 0 }
  0x1e   :  { %35 = vsyncpa [#allocation10], 0 }
  0x1f   :  { %36 = vsyncpa [#allocation19], 0 }
  0x20   :  { %37 = vsyncpa [#allocation22], 0 }
  0x21   :  { %38 = vsyncpa [#allocation5], 0 }
  0x22   :  { %40 = vsyncpa [#allocation5 + $0x1], 0  ;;  %s4671_s5 = smov 0   ;;  %s4673_s26 = smov 0  }
  0x23   :  { %s4675_s27 = smov 0   ;;  %s4677_s28 = smov 0  }
  0x24   :  { %s4679_s6 = smov 0   ;;  %s4681_s2 = smov 0  }
  0x25   :  { %s4683_s29 = smov 0   ;;  %s4685_s0 = smov 0  }
  0x26   :  { %s4687_s7 = smov 0   ;;  %s4689_s30 = smov 0  }
  0x27   :  { %s4691_s3 = smov 0  }
  0x28 LB: > { %5458 = sst [smem:[#allocation38_spill]] %s4494_s26  ;;  %s4727_s25 = sadd.s32 4294967295, %s4530_s3   ;;  %s4530_s3 = sphi %s4691_s3, %s46_s3   ;;  %s4526_s30 = sphi %s4689_s30, %s5543_s30   ;;  %s4522_s7 = sphi %s4687_s7, %s5542_s7   ;;  %s4518_s0 = sphi %s4685_s0, %s5541_s0   ;;  %s4514_s29 = sphi %s4683_s29, %s5540_s29   ;;  %s4510_s2 = sphi %s4681_s2, %s5539_s2   ;;  %s4506_s6 = sphi %s4679_s6, %s5538_s6   ;;  %s4502_s28 = sphi %s4677_s28, %s5537_s28   ;;  %s4498_s27 = sphi %s4675_s27, %s5536_s27   ;;  %s4494_s26 = sphi %s4673_s26, %s5535_s26   ;;  %s4490_s5 = sphi %s4671_s5, %s5534_s5  }
  0x29   : > { %5459 = sst [smem:[#allocation39_spill]] %s4498_s27  ;;  %p2995_p0 = scmp.ge.s32.totalorder %s4530_s3, 1 }
  0x2a   : > { %5460 = sst [smem:[#allocation40_spill]] %s4502_s28  ;;  %p79_p1 = scmp.eq.s32.totalorder %s4727_s25, 0 }
  0x2b   : > { %5461 = sst [smem:[#allocation41_spill]] %s4506_s6  ;;  %p663_p2 = scmp.lt.s32.totalorder %s4530_s3, 5 }
  0x2c   : > { %5462 = sst [smem:[#allocation42_spill]] %s4510_s2  ;;  %s4532_s23 = smov [#allocation8]  }
  0x2d   : > { %5463 = sst [smem:[#allocation43_spill]] %s4514_s29  ;;  %p4735_p3 = pnand %p2995_p0, %p663_p2 }
  0x2e   : > { %5464 = sst [smem:[#allocation44_spill]] %s4518_s0  ;;  %s677_s21 = sshll.u32 %s4532_s23, 4  ;;  %s678_s21 = int_to_ptr.vmem [resolvable:$true] %s677_s21 }
  0x2f   : > { %5465 = sst [smem:[#allocation45_spill]] %s4522_s7  ;;  %p3743_p4 = pneg %p4735_p3 }
  0x30   : > { %5466 = sst [smem:[#allocation46_spill]] %s4526_s30  ;;  %s2994_s4 = sadd.s32 4294967294, %s4530_s3  }
  0x31   : > { %5467 = sst [smem:[#allocation47_spill]] %s4530_s3  ;;  %p4743_p5 = pnand %p3743_p4, %p79_p1 }
  0x32   : > { %s5468_s1 = sld [smem:[#allocation58_spill]]  ;;  %s58_s19 = sadd.s32 1, %s4526_s30 }
  0x33   : > { %s65_s23 = sadd.s32 1, %s4510_s2  ;;  %p5412_p7 = scmp.ne.s32.totalorder %s4510_s2, %s4506_s6 }
  0x34   : > { %p73_p8 = scmp.eq.s32.totalorder %s4530_s3, 0  ;;  %p5411_p10 = scmp.ne.s32.totalorder %s4506_s6, %s4502_s28 }
  0x35   : > { %s159_s15 = sadd.s32 1, %s4498_s27  ;;  %p166_p0 = scmp.ne.s32.totalorder %s4498_s27, %s4494_s26 }
  0x36   : > { %p4764_p9 = por %p73_p8, %p5412_p7  ;;  %p4777_p12 = por %p79_p1, %p5411_p10 }
  0x37   : > { %p172_p2 = scmp.ne.s32.totalorder %s4494_s26, %s4490_s5  ;;  %p650_p10 = scmp.eq.s32.totalorder %s4727_s25, 3 }
  0x38   : > { %s675_s24 = sshll.u32 %s5468_s1, 4  ;;  %s55_s1 = sadd.s32 1, %s4522_s7  ;;  %s676_s24 = int_to_ptr.hbm [resolvable:$true] %s675_s24 }
  0x39   : > { %3746 = dma.hbm_to_vmem [thread:$0]  (!%p4743_p5), %s676_s24, 16, %s678_s21, [#allocation7]  }
  0x3a   : > { %p56_p6 = scmp.ge.s32.totalorder %s55_s1, 2  ;;  %p656_p7 = scmp.eq.s32.totalorder %s2994_s4, 3 }
  0x3b   : > { %s5473_s17 = scalar_select %p4777_p12, 1, 0 }
  0x3c   : > { %s5545_s1 = smov (%p56_p6, %s55_s1), 0  ;;  %s5547_s19 = smov (!%p56_p6, %s58_s19), %s4526_s30 }
  0x3d   : > { %5471 = sst [smem:[#allocation48_spill]] %s5545_s1  ;;  %p60_p11 = scmp.ge.s32.totalorder %s5547_s19, 2 }
  0x3e   : > { %s156_s24 = ssub.s32 %s4522_s7, %s5545_s1  ;;  %5474 = sst [smem:[#allocation49_spill]] %s5473_s17 }
  0x3f   : > { %p157_p13 = scmp.eq.s32.totalorder %s156_s24, 0  ;;  %s5549_s19 = smov (%p60_p11, %s5547_s19), 0 }
  0x40   : > { %5475 = sst [smem:[#allocation50_spill]] %s5549_s19  ;;  %s62_s1 = ssub.s32 %s4526_s30, %s5549_s19 }
  0x41   : > { %p63_p4 = scmp.eq.s32.totalorder %s62_s1, 0  ;;  %p4792_p6 = por %p166_p0, %p73_p8 }
  0x42   : > { %s4797_s11 = scalar_select %p157_p13, %s4498_s27, %s159_s15  }
  0x43   : > { %s4800_s24 = scalar_select %p63_p4, %s4510_s2, %s65_s23  }
  0x44   : > { %5477 = sst [smem:[#allocation51_spill]] %s4797_s11  ;;  %p4804_p11 = por %p172_p2, %p79_p1 }
  0x45   : > { %5478 = sst [smem:[#allocation52_spill]] %s4800_s24  ;;  %p3797_p12 = scmp.lt.s32.totalorder %s4530_s3, 4 }
  0x46   : > { %s5479_s13 = scalar_select %p4804_p11, 1, 0 }
  0x47   : > { %p5481_p8 = scmp.ne.s32.totalorder %s4510_s2, %s4506_s6  ;;  %s768_s15 = sand.u32 1, %s4530_s3  }
  0x48   : > { %5480 = sst [smem:[#allocation53_spill]] %s5479_s13  ;;  %p5484_p13 = scmp.ne.s32.totalorder %s4506_s6, %s4502_s28 }
  0x49   : > { %p4813_p0 = por %p650_p10, %p5481_p8  ;;  %s770_s23 = sand.u32 1, %s4510_s2  }
  0x4a   : > { %p4821_p4 = por %p656_p7, %p5484_p13  ;;  %s3004_s19 = sshll.u32 %s4526_s30, 3 }
  0x4b   : > { %s5482_s5 = scalar_select %p4813_p0, 1, 0 }
  0x4c   : > { %s5485_s1 = scalar_select %p4821_p4, 1, 0 }
  0x4d   : > { %5483 = sst [smem:[#allocation54_spill]] %s5482_s5  ;;  %s3003_s24 = sshll.u32 %s770_s23, 3 }
  0x4e   : > { %5486 = sst [smem:[#allocation55_spill]] %s5485_s1  ;;  %s772_s26 = scalar_lea.vmem [#allocation3], %s3003_s24 }
  0x4f   : > { %s5487_s29 = sld [smem:[#allocation56_spill]]  ;;  %s780_s5 = sshll.u32 %s772_s26, 4  ;;  %s781_s5 = int_to_ptr.vmem [resolvable:$true] %s780_s5 }
  0x50   : > { %p3763_p7 = pnand %p3797_p12, %p4764_p9  ;;  %p4838_p10 = pnand %p3797_p12, %p4792_p6 }
  0x51   : > { %s4842_s1 = scalar_lea.sflag [#allocation4], %s768_s15  ;;  %s790_s26 = scalar_lea.vmem [#allocation6], %s770_s23 }
  0x52   : > { %s4849_s14 = scalar_lea.sflag [#allocation7], %s768_s15  ;;  %s4853_s21 = sand.u32 1, %s4498_s27  }
  0x53   : > { %s3697_s15 = smul.u32 6, %s4853_s21  ;;  %s4533_s28 = smov 384  }
  0x54   : > { %s5491_s9 = sld [smem:[#allocation59_spill]] }
  0x55   : > { %s776_s4 = scalar_lea.hbm %s5487_s29, %s3004_s19  ;;  %s5489_s19 = sld [smem:[#allocation57_spill]] }
  0x56   : > { %s778_s13 = sshll.u32 %s776_s4, 4  ;;  %s797_s4 = sshll.u32 %s790_s26, 4  ;;  %s779_s13 = int_to_ptr.hbm [resolvable:$true] %s778_s13  ;;  %s798_s4 = int_to_ptr.vmem [resolvable:$true] %s797_s4 }
  0x57   : > { %3765 = dma.hbm_to_vmem [thread:$0]  (!%p3763_p7), %s779_s13, 128, %s781_s5, %s4842_s1  }
  0x58   : > { %s3696_s13 = smul.u32 384, %s4522_s7  ;;  %s830_s27 = scalar_lea.vmem [#allocation12], %s3697_s15 }
  0x59   : > { %s3695_s5 = smul.u32 384, %s4853_s21  ;;  %s838_s3 = sshll.u32 %s830_s27, 4  ;;  %s839_s3 = int_to_ptr.vmem [resolvable:$true] %s838_s3 }
  0x5a   : > { %s5493_s18 = sld [smem:[#allocation74_spill]] }
  0x5b   : > { %s793_s29 = scalar_lea.hbm %s5489_s19, %s4526_s30  ;;  %s5490_s19 = sld [smem:[#allocation60_spill]] }
  0x5c   : > { %s795_s24 = sshll.u32 %s793_s29, 4  ;;  %s808_s26 = scalar_lea.vmem [#allocation11], %s3695_s5  ;;  %s796_s24 = int_to_ptr.hbm [resolvable:$true] %s795_s24 }
  0x5d   : > { %3768 = dma.hbm_to_vmem [thread:$0]  (!%p3763_p7), %s796_s24, 16, %s798_s4, %s4849_s14  }
  0x5e   : > { %s816_s30 = sshll.u32 %s808_s26, 4  ;;  %s4534_s24 = smov 24   ;;  %s817_s30 = int_to_ptr.vmem [resolvable:$true] %s816_s30 }
  0x5f   : > { %s3698_s4 = smul.u32 6, %s4522_s7  ;;  %s5492_s5 = sld [smem:[#allocation61_spill]] }
  0x60   : > { %s715_s6 = sshll.u32 %s5493_s18, 4  ;;  %s5495_s27 = sld [smem:[#allocation64_spill]]  ;;  %s716_s6 = int_to_ptr.hbm [resolvable:$true] %s715_s6 }
  0x61   : > { %s813_s23 = scalar_lea.hbm %s5490_s19, %s3696_s13  ;;  %s687_s13 = sshll.u32 %s5491_s9, 4  ;;  %s688_s13 = int_to_ptr.hbm [resolvable:$true] %s687_s13 }
  0x62   : > { %s814_s29 = sshll.u32 %s813_s23, 4  ;;  %s4888_s9 = sshll.u32 %s4522_s7, 7  ;;  %s815_s29 = int_to_ptr.hbm [resolvable:$true] %s814_s29 }
  0x63   : > { %3771 = dma.hbm_to_vmem [thread:$0]  (!%p4838_p10), %s815_s29, 6144, %s817_s30, %s4842_s1, %s4533_s28, %s4533_s28, %s4534_s24  }
  0x64   : > { %s4535_s28 = smov [#allocation9]   ;;  %s4536_s29 = smov [#allocation18]  }
  0x65   : > { %s834_s23 = scalar_lea.hbm %s5492_s5, %s3698_s4  ;;  %s689_s30 = sshll.u32 %s4535_s28, 4  ;;  %s690_s30 = int_to_ptr.vmem [resolvable:$true] %s689_s30 }
  0x66   : > { %s836_s26 = sshll.u32 %s834_s23, 4  ;;  %s717_s15 = sshll.u32 %s4536_s29, 4  ;;  %s837_s26 = int_to_ptr.hbm [resolvable:$true] %s836_s26  ;;  %s718_s15 = int_to_ptr.vmem [resolvable:$true] %s717_s15 }
  0x67   : > { %3774 = dma.hbm_to_vmem [thread:$0]  (!%p4838_p10), %s837_s26, 96, %s839_s3, %s4849_s14  }
  0x68   : > { %3749 = dma.hbm_to_vmem [thread:$0]  (!%p4743_p5), %s688_s13, 16, %s690_s30, [#allocation10]  }
  0x69   : > { %s4880_s24 = sshll.u32 %s4853_s21, 7  ;;  %s4537_s3 = smov 64  }
  0x6a   : > { %s4538_s4 = smov 4   ;;  %s5494_s19 = sld [smem:[#allocation62_spill]] }
  0x6b   : > { %3755 = dma.hbm_to_vmem [thread:$0]  (!%p4743_p5), %s716_s6, 1024, %s718_s15, [#allocation19], %s4537_s3, %s4537_s3, %s4538_s4  }
  0x6c   : > { %s849_s23 = scalar_lea.vmem [#allocation13], %s4880_s24  ;;  %s879_s6 = scalar_lea.hbm %s5495_s27, %s4522_s7 }
  0x6d   : > { %s857_s26 = sshll.u32 %s849_s23, 4  ;;  %s876_s29 = scalar_lea.vmem [#allocation14], %s4853_s21  ;;  %s858_s26 = int_to_ptr.vmem [resolvable:$true] %s857_s26 }
  0x6e   : > { %s883_s15 = sshll.u32 %s876_s29, 4  ;;  %s881_s18 = sshll.u32 %s879_s6, 4  ;;  %s884_s15 = int_to_ptr.vmem [resolvable:$true] %s883_s15  ;;  %s882_s18 = int_to_ptr.hbm [resolvable:$true] %s881_s18 }
  0x6f   : > { %s5496_s16 = sld [smem:[#allocation72_spill]]  ;;  %s4540_s27 = smov [#allocation20]  }
  0x70   : > { %s854_s5 = scalar_lea.hbm %s5494_s19, %s4888_s9  ;;  %s5497_s20 = sld [smem:[#allocation76_spill]] }
  0x71   : > { %s855_s28 = sshll.u32 %s854_s5, 4  ;;  %s4539_s5 = smov [#allocation17]   ;;  %s856_s28 = int_to_ptr.hbm [resolvable:$true] %s855_s28 }
  0x72   : > { %3777 = dma.hbm_to_vmem [thread:$0]  (!%p4838_p10), %s856_s28, 2048, %s858_s26, %s4842_s1, %s4537_s3, %s4537_s3, %s4538_s4  }
  0x73   : > { %3780 = dma.hbm_to_vmem [thread:$0]  (!%p4838_p10), %s882_s18, 16, %s884_s15, %s4849_s14  }
  0x74   : > { %s700_s23 = sshll.u32 %s4539_s5, 4  ;;  %s5498_s22 = sld [smem:[#allocation78_spill]]  ;;  %s701_s23 = int_to_ptr.vmem [resolvable:$true] %s700_s23 }
  0x75   : > { %s698_s19 = sshll.u32 %s5496_s16, 4  ;;  %s734_s6 = sshll.u32 %s4540_s27, 4  ;;  %s699_s19 = int_to_ptr.hbm [resolvable:$true] %s698_s19  ;;  %s735_s6 = int_to_ptr.vmem [resolvable:$true] %s734_s6 }
  0x76   : > { %s732_s21 = sshll.u32 %s5497_s20, 4  ;;  %s4541_s29 = smov [#allocation21]   ;;  %s733_s21 = int_to_ptr.hbm [resolvable:$true] %s732_s21 }
  0x77   : > { %3752 = dma.hbm_to_vmem [thread:$0]  (!%p4743_p5), %s699_s19, 1024, %s701_s23, [#allocation10], %s4537_s3, %s4537_s3, %s4538_s4  }
  0x78   : > { %3758 = dma.hbm_to_vmem [thread:$0]  (!%p4743_p5), %s733_s21, 1024, %s735_s6, [#allocation19], %s4537_s3, %s4537_s3, %s4538_s4  }
  0x79   : > { %s751_s15 = sshll.u32 %s4541_s29, 4  ;;  %s5499_s10 = sld [smem:[#allocation66_spill]]  ;;  %s752_s15 = int_to_ptr.vmem [resolvable:$true] %s751_s15 }
  0x7a   : > { %s749_s18 = sshll.u32 %s5498_s22, 4  ;;  %s900_s23 = scalar_lea.vmem [#allocation15], %s4880_s24  ;;  %s750_s18 = int_to_ptr.hbm [resolvable:$true] %s749_s18 }
  0x7b   : > { %3761 = dma.hbm_to_vmem [thread:$0]  (!%p4743_p5), %s750_s18, 1024, %s752_s15, [#allocation22], %s4537_s3, %s4537_s3, %s4538_s4  }
  0x7c   : > { %s908_s26 = sshll.u32 %s900_s23, 4  ;;  %s4542_s28 = smov 128   ;;  %s909_s26 = int_to_ptr.vmem [resolvable:$true] %s908_s26 }
  0x7d   : > { %s4543_s21 = smov 8   ;;  %s5500_s12 = sld [smem:[#allocation68_spill]] }
  0x7e   : > { %s929_s6 = scalar_lea.vmem [#allocation16], %s4880_s24  ;;  %s5501_s18 = sld [smem:[#allocation41_spill]] (!%p4735_p3) }
  0x7f   : > { %s905_s19 = scalar_lea.hbm %s5499_s10, %s4888_s9  ;;  %s937_s29 = sshll.u32 %s929_s6, 4  ;;  %s938_s29 = int_to_ptr.vmem [resolvable:$true] %s937_s29 }
  0x80   : > { %s906_s5 = sshll.u32 %s905_s19, 4  ;;  %s969_s15 = sand.u32 (!%p4735_p3), 1, %s4727_s25   ;;  %s907_s5 = int_to_ptr.hbm [resolvable:$true] %s906_s5 }
  0x81   : > { %3783 = dma.hbm_to_vmem [thread:$0]  (!%p4838_p10), %s907_s5, 2048, %s909_s26, %s4842_s1, %s4542_s28, %s4542_s28, %s4543_s21  }
  0x82   : > { %967 = sbr.rel (%p4735_p3) target bundleno = 2756 (0xac4), region = 116  ;;  %s5502_s1 = sld [smem:[#allocation49_spill]] (!%p4735_p3) }
  0x83   : > { %s934_s27 = scalar_lea.hbm %s5500_s12, %s4888_s9  ;;  %s4959_s9 = scalar_lea.sflag (!%p4735_p3), [#allocation4], %s969_s15 }
  0x84   : > { %s935_s8 = sshll.u32 %s934_s27, 4  ;;  %s4956_s13 = sand.u32 (!%p4735_p3), 1, %s5501_s18   ;;  %s936_s8 = int_to_ptr.hbm [resolvable:$true] %s935_s8 }
  0x85   : > { %3786 = dma.hbm_to_vmem [thread:$0]  (!%p4838_p10), %s936_s8, 2048, %s938_s29, %s4849_s14, %s4537_s3, %s4537_s3, %s4538_s4  }
  0x86   : > { %s5431_s24 = sshll.u32 (!%p4735_p3), %s4956_s13, 3 }
  0x87   : > { %s4963_s2 = scalar_lea.vmem [#allocation3], %s5431_s24 }
  0x88   : > { %p5503_p5 = scmp.ne.s32.totalorder %s5502_s1, 0 }
  0x8a   : > { %4433 = dma.done.wait (%p5503_p5), %s4959_s9, 128  }
  0x8b   : > { %4435 = vsyncadd (%p5503_p5), %s4959_s9, 4294967168  ;;  %s980_s0 = scalar_lea.sflag [#allocation7], %s969_s15 }
  0x8c   : > { %4437 = dma.done.wait (%p5503_p5), %s980_s0, 16  }
  0x8d   : > { %4439 = vsyncadd (%p5503_p5), %s980_s0, 4294967280 }
  0x8e   : > { %4441 = dma.done.wait (%p79_p1), [#allocation7], 16  }
  0x8f   : > { %4443 = vsyncadd (%p79_p1), [#allocation7], 4294967280 }
  0x90   : > { %4445 = dma.done.wait (%p79_p1), [#allocation10], 16  }
  0x91   : > { %4447 = vsyncadd (%p79_p1), [#allocation10], 4294967280  ;;  %s5504_s3 = sld [smem:[#allocation38_spill]] }
  0x97   : > { %s4985_s11 = sand.u32 1, %s5504_s3  }
  0x98   : > { %s3699_s19 = smul.u32 384, %s4985_s11 }
  0x9a   : > { %s4988_s5 = scalar_lea.vmem [#allocation11], %s3699_s19 }
  0x9b   : > { %4449 = dma.done.wait (%p4804_p11), %s4959_s9, 6144  }
  0x9c   : > { %4451 = vsyncadd (%p4804_p11), %s4959_s9, 4294961152  ;;  %s3700_s23 = smul.u32 6, %s4985_s11 }
  0x9e   : > { %s4997_s26 = scalar_lea.vmem [#allocation12], %s3700_s23 }
  0x9f   : > { %4453 = dma.done.wait (%p4804_p11), %s980_s0, 96  }
  0xa0   : > { %4455 = vsyncadd (%p4804_p11), %s980_s0, 4294967200  ;;  %s3019_s28 = sshll.u32 %s4985_s11, 7 }
  0xa1   : > { %s5004_s21 = scalar_lea.vmem [#allocation13], %s3019_s28 }
  0xa2   : > { %4457 = dma.done.wait (%p4804_p11), %s4959_s9, 2048  }
  0xa3   : > { %4459 = vsyncadd (%p4804_p11), %s4959_s9, 4294965248 }
  0xa4   : > { %4461 = dma.done.wait (%p4804_p11), %s980_s0, 16  }
  0xa5   : > { %4463 = vsyncadd (%p4804_p11), %s980_s0, 4294967280  ;;  %s5017_s17 = scalar_lea.vmem [#allocation15], %s3019_s28 }
  0xa6   : > { %4465 = dma.done.wait (%p4804_p11), %s4959_s9, 2048  }
  0xa7   : > { %4467 = vsyncadd (%p4804_p11), %s4959_s9, 4294965248  ;;  %s5025_s27 = scalar_lea.vmem [#allocation16], %s3019_s28 }
  0xa8   : > { %4469 = dma.done.wait (%p4804_p11), %s980_s0, 2048  }
  0xa9   : > { %4471 = vsyncadd (%p4804_p11), %s980_s0, 4294965248 }
  0xaa   : > { %4473 = dma.done.wait (%p79_p1), [#allocation10], 1024  }
  0xab   : > { %4475 = vsyncadd (%p79_p1), [#allocation10], 4294966272 }
  0xac   : > { %4477 = dma.done.wait (%p79_p1), [#allocation19], 2048  }
  0xad   : > { %4479 = vsyncadd (%p79_p1), [#allocation19], 4294965248 }
  0xae   : > { %4481 = dma.done.wait (%p79_p1), [#allocation22], 1024  }
  0xaf   : > { %4483 = vsyncadd (%p79_p1), [#allocation22], 4294966272  ;;  %s5506_s8 = sld [smem:[#allocation43_spill]]  ;;  %s5513_s9 = sshll.u32 %s4956_s13, 3 }
  0xb0   : > { %s5508_s25 = sld [smem:[#allocation65_spill]]  ;;  %s5075_s0 = scalar_lea.vmem [#allocation23], %s5513_s9 }
  0xb1   : > { %s5509_s28 = sld [smem:[#allocation69_spill]] }
  0xb2   : > { %s5510_s10 = sld [smem:[#allocation67_spill]] }
  0xb3   : > { %s5511_s16 = sld [smem:[#allocation70_spill]] }
  0xb4   : > { %s5512_s15 = sld [smem:[#allocation71_spill]] }
  0xb5   : > { %p1189_p3 = scmp.lt.s32.totalorder %s5506_s8, 1  ;;  %p3028_p1 = scmp.ne.s32.totalorder %s5506_s8, 0 }
  0xb7   : > { %s5045_s6 = scalar_select %p1189_p3, %s5506_s8, 1 }
  0xb8   : > { %1211 = sbr.rel (%p3028_p1) target bundleno = 457 (0x1c9), region = 176 }
  0xb9   : > { %s1194_s3 = scalar_lea.vmem %s5508_s25, %s5045_s6  ;;  %s3027_s4 = sshll.u32 %s5045_s6, 1 }
  0xba   : > { %s1201_s30 = scalar_lea.vmem %s5509_s28, %s5045_s6  ;;  %s5063_s12 = scalar_lea.vmem %s5510_s10, %s3027_s4 }
  0xbb   : > { %s1204_s20 = scalar_lea.vmem %s5511_s16, %s5045_s6  ;;  %s1207_s7 = scalar_lea.vmem %s5512_s15, %s5045_s6 }
  0xbd   : > { %v1212_v0 = vld [vmem:[%s4963_s2] sm:$0xff]  ;;  %v4544_v1 = vmov 128.0   ;;  %v3907_v21 = vld [vmem:[#allocation8] ss:$0 sm:$0xff]  ;;  %v3908_v23 = vld [vmem:[#allocation9] ss:$0 sm:$0xff] }
  0xbe   : > { %1215 = vadd.xlane.f32.xlu0 %v1212_v0  ;;  %3909 = vrcp.f32 %v4544_v1 }
  0xc4   : > { %v3910_v2 = vpop.eup %3909 }
  0xc5   : > { %v1218_v3 = vmul.f32 128.0, %v3910_v2  ;;  %vm1222_vm0 = vweird.f32 %v3910_v2 }
  0xc7   : > { %v1219_v4 = vsub.f32 1.0, %v1218_v3 }
  0xc9   : > { %v1220_v5 = vmul.f32 %v3910_v2, %v1219_v4 }
  0xcb   : > { %v1221_v6 = vadd.f32 %v3910_v2, %v1220_v5 }
  0xcd   : > { %v1223_v7 = vsel %vm1222_vm0, %v3910_v2, %v1221_v6 }
 0x131   : > { %v1216_v8 = vpop.xlane.xlu0 %1215 }
 0x132   : > { %v1224_v9 = vmul.f32 %v1223_v7, %v1216_v8 }
 0x134   : > { %v1225_v10 = vsub.f32 %v1212_v0, %v1224_v9 }
 0x136   : > { %v1226_v11 = vmul.f32 %v1225_v10, %v1225_v10 }
 0x138   : > { %1227 = vadd.xlane.f32.xlu0 %v1226_v11 }
 0x1ab   : > { %v1228_v12 = vpop.xlane.xlu0 %1227 }
 0x1ac   : > { %v1229_v13 = vmul.f32 %v1228_v12, %v1223_v7 }
 0x1ae   : > { %v1230_v14 = vadd.f32 1e-12, %v1229_v13 }
 0x1b0   : > { %3911 = vrsqrt.f32 %v1230_v14  ;;  %vm1237_vm2 = vweird.f32 %v1230_v14 }
 0x1b6   : > { %v3912_v15 = vpop.eup %3911 }
 0x1b7   : > { %v1232_v16 = vmul.f32 %v3912_v15, %v1230_v14  ;;  %vm1238_vm1 = vweird.f32 %v3912_v15 }
 0x1b8   : > { %vm1239_vm3 = vmor %vm1237_vm2, %vm1238_vm1 }
 0x1b9   : > { %v1233_v17 = vmul.f32 %v3912_v15, %v1232_v16 }
 0x1bb   : > { %v1234_v18 = vmul.f32 0.5, %v1233_v17 }
 0x1bd   : > { %v1235_v19 = vsub.f32 1.5, %v1234_v18 }
 0x1bf   : > { %v1236_v20 = vmul.f32 %v3912_v15, %v1235_v19 }
 0x1c1   : > { %v1240_v22 = vsel %vm1239_vm3, %v3912_v15, %v1236_v20 }
 0x1c2   : > { %v1241_v24 = vmul.f32 %v1240_v22, %v1225_v10 }
 0x1c4   : > { %v1245_v25 = vmul.f32 %v3907_v21, %v1241_v24 }
 0x1c6   : > { %v1249_v26 = vadd.f32 %v3908_v23, %v1245_v25 }
 0x1c8   : > { %1250 = vst [vmem:[#allocation2] sm:$0xff] %v1249_v26 }
 0x1c9 PF: > { %v3199_v27 = vld [vmem:[%s4988_s5 + $0x150] sm:$0xf]  ;;  %v3612_v28 = vld [vmem:[%s4988_s5 + $0x164] sm:$0xf0]  ;;  %v3175_v29 = vld [vmem:[%s4988_s5 + $0x120] sm:$0xf] }
 0x1ca   : > { %v3200_v30 = vor.u32 %v3612_v28, %v3199_v27  ;;  %v3606_v31 = vld [vmem:[%s4988_s5 + $0x134] sm:$0xf0]  ;;  %v3609_v32 = vld [vmem:[%s4988_s5 + $0x154] sm:$0xf]  ;;  %v3201_v33 = vld [vmem:[%s4988_s5 + $0x168] sm:$0xf0] }
 0x1cb   : > { %v3176_v34 = vor.u32 %v3606_v31, %v3175_v29  ;;  %v3204_v35 = vor.u32 %v3609_v32, %v3201_v33  ;;  %v3603_v36 = vld [vmem:[%s4988_s5 + $0x124] sm:$0xf]  ;;  %v3177_v37 = vld [vmem:[%s4988_s5 + $0x138] sm:$0xf0]  ;;  %v3151_v38 = vld [vmem:[%s4988_s5 + $0xf0] sm:$0xf] }
 0x1cc   : > { %1555 = vmatpush.bf16.msra.mxu0 %v3200_v30  ;;  %v3600_v39 = vld [vmem:[%s4988_s5 + $0x104] sm:$0xf0]  ;;  %v3180_v40 = vor.u32 %v3603_v36, %v3177_v37  ;;  %v3597_v41 = vld [vmem:[%s4988_s5 + $0xf4] sm:$0xf]  ;;  %v3153_v42 = vld [vmem:[%s4988_s5 + $0x108] sm:$0xf0] }
 0x1cd   : > { %1568 = vmatpush.bf16.msra.mxu1 %v3204_v35  ;;  %v3152_v43 = vor.u32 %v3600_v39, %v3151_v38  ;;  %v3127_v44 = vld [vmem:[%s4988_s5 + $0xc0] sm:$0xf]  ;;  %v3594_v45 = vld [vmem:[%s4988_s5 + $0xd4] sm:$0xf0]  ;;  %v3610_v46 = vld [vmem:[%s4988_s5 + $0x15c] sm:$0xf]  ;;  %v3156_v48 = vor.u32 %v3597_v41, %v3153_v42 }
 0x1ce   : > { %v3209_v47 = vld [vmem:[%s4988_s5 + $0x170] sm:$0xf0]  ;;  %v3591_v50 = vld [vmem:[%s4988_s5 + $0xc4] sm:$0xf]  ;;  %v3129_v51 = vld [vmem:[%s4988_s5 + $0xd8] sm:$0xf0]  ;;  %v3128_v53 = vor.u32 %v3594_v45, %v3127_v44 }
 0x1cf   : > { %v3212_v49 = vor.u32 %v3610_v46, %v3209_v47  ;;  %v3604_v52 = vld [vmem:[%s4988_s5 + $0x12c] sm:$0xf]  ;;  %v3185_v54 = vld [vmem:[%s4988_s5 + $0x140] sm:$0xf0]  ;;  %v3103_v55 = vld [vmem:[%s4988_s5 + $0x90] sm:$0xf]  ;;  %v3132_v59 = vor.u32 %v3591_v50, %v3129_v51 }
 0x1d0   : > { %1556 = vmatpush.bf16.msra.mxu0 %v3176_v34  ;;  %v3588_v56 = vld [vmem:[%s4988_s5 + $0xa4] sm:$0xf0]  ;;  %v3188_v57 = vor.u32 %v3604_v52, %v3185_v54  ;;  %v3598_v58 = vld [vmem:[%s4988_s5 + $0xfc] sm:$0xf]  ;;  %v3161_v60 = vld [vmem:[%s4988_s5 + $0x110] sm:$0xf0] }
 0x1d1   : > { %1569 = vmatpush.bf16.msra.mxu1 %v3180_v40  ;;  %1594 = vmatpush.bf16.msra.mxu3 %v3212_v49  ;;  %v3585_v61 = vld [vmem:[%s4988_s5 + $0x94] sm:$0xf]  ;;  %v3105_v62 = vld [vmem:[%s4988_s5 + $0xa8] sm:$0xf0]  ;;  %v3104_v63 = vor.u32 %v3588_v56, %v3103_v55  ;;  %v3079_v0 = vld [vmem:[%s4988_s5 + $0x60] sm:$0xf]  ;;  %v3164_v1 = vor.u32 %v3598_v58, %v3161_v60 }
 0x1d2   : > { %v3582_v2 = vld [vmem:[%s4988_s5 + $0x74] sm:$0xf0]  ;;  %v3592_v3 = vld [vmem:[%s4988_s5 + $0xcc] sm:$0xf]  ;;  %v3137_v4 = vld [vmem:[%s4988_s5 + $0xe0] sm:$0xf0]  ;;  %v3108_v5 = vor.u32 %v3585_v61, %v3105_v62 }
 0x1d3   : > { %v3579_v6 = vld [vmem:[%s4988_s5 + $0x64] sm:$0xf]  ;;  %v3081_v7 = vld [vmem:[%s4988_s5 + $0x78] sm:$0xf0]  ;;  %v3080_v8 = vor.u32 %v3582_v2, %v3079_v0  ;;  %v3055_v9 = vld [vmem:[%s4988_s5 + $0x30] sm:$0xf]  ;;  %v3140_v11 = vor.u32 %v3592_v3, %v3137_v4 }
 0x1d4   : > { %1557 = vmatpush.bf16.msra.mxu0 %v3152_v43  ;;  %v3576_v10 = vld [vmem:[%s4988_s5 + $0x44] sm:$0xf0]  ;;  %v3573_v12 = vld [vmem:[%s4988_s5 + $0x34] sm:$0xf]  ;;  %v3057_v13 = vld [vmem:[%s4988_s5 + $0x48] sm:$0xf0]  ;;  %v3084_v16 = vor.u32 %v3579_v6, %v3081_v7 }
 0x1d5   : > { %1570 = vmatpush.bf16.msra.mxu1 %v3156_v48  ;;  %1595 = vmatpush.bf16.msra.mxu3 %v3188_v57  ;;  %v3586_v14 = vld [vmem:[%s4988_s5 + $0x9c] sm:$0xf]  ;;  %v3113_v15 = vld [vmem:[%s4988_s5 + $0xb0] sm:$0xf0]  ;;  %v3056_v17 = vor.u32 %v3576_v10, %v3055_v9  ;;  %v3031_v18 = vld [vmem:[%s4988_s5] sm:$0xf]  ;;  %v3060_v25 = vor.u32 %v3573_v12, %v3057_v13 }
 0x1d6   : > { %v3116_v19 = vor.u32 %v3586_v14, %v3113_v15  ;;  %v3570_v20 = vld [vmem:[%s4988_s5 + $0x14] sm:$0xf0]  ;;  %v3580_v21 = vld [vmem:[%s4988_s5 + $0x6c] sm:$0xf]  ;;  %v3089_v22 = vld [vmem:[%s4988_s5 + $0x80] sm:$0xf0] }
 0x1d7   : > { %v3215_v23 = vld [vmem:[%s4988_s5 + $0x160] sm:$0xf]  ;;  %v3614_v24 = vld [vmem:[%s4988_s5 + $0x174] sm:$0xf0]  ;;  %v3567_v26 = vld [vmem:[%s4988_s5 + $0x4] sm:$0xf]  ;;  %v3032_v28 = vor.u32 %v3570_v20, %v3031_v18  ;;  %v3092_v30 = vor.u32 %v3580_v21, %v3089_v22 }
 0x1d8   : > { %1558 = vmatpush.bf16.msra.mxu0 %v3128_v53  ;;  %v3033_v27 = vld [vmem:[%s4988_s5 + $0x18] sm:$0xf0]  ;;  %v5125_v29 = vld [vmem:[#allocation2] sm:$0xff]  ;;  %v3216_v31 = vor.u32 %v3614_v24, %v3215_v23  ;;  %v3065_v33 = vld [vmem:[%s4988_s5 + $0x50] sm:$0xf0]  ;;  %s5514_s10 = scalar_lea.vmem [#allocation6], %s4956_s13 }
 0x1d9   : > { %1571 = vmatpush.bf16.msra.mxu1 %v3132_v59  ;;  %1596 = vmatpush.bf16.msra.mxu3 %v3164_v1  ;;  %v3574_v32 = vld [vmem:[%s4988_s5 + $0x3c] sm:$0xf]  ;;  %v3191_v34 = vld [vmem:[%s4988_s5 + $0x130] sm:$0xf]  ;;  %v3608_v35 = vld [vmem:[%s4988_s5 + $0x144] sm:$0xf0]  ;;  %v3036_v36 = vor.u32 %v3567_v26, %v3033_v27  ;;  %v5133_v37 = vpack.c.bf16 %v5125_v29, %v5125_v29 }
 0x1da   : > { %v3068_v38 = vor.u32 %v3574_v32, %v3065_v33  ;;  %v3207_v39 = vld [vmem:[%s4988_s5 + $0x158] sm:$0xf]  ;;  %v3613_v40 = vld [vmem:[%s4988_s5 + $0x16c] sm:$0xf0]  ;;  %v3183_v41 = vld [vmem:[%s4988_s5 + $0x128] sm:$0xf]  ;;  %v3192_v42 = vor.u32 %v3608_v35, %v3191_v34 }
 0x1db   : > { %v3568_v43 = vld [vmem:[%s4988_s5 + $0xc] sm:$0xf]  ;;  %v3041_v44 = vld [vmem:[%s4988_s5 + $0x20] sm:$0xf0]  ;;  %v3208_v45 = vor.u32 %v3613_v40, %v3207_v39  ;;  %v3607_v46 = vld [vmem:[%s4988_s5 + $0x13c] sm:$0xf0] }
 0x1dc   : > { %1559 = vmatpush.bf16.msra.mxu0 %v3104_v63  ;;  %v3167_v47 = vld [vmem:[%s4988_s5 + $0x100] sm:$0xf]  ;;  %v3602_v48 = vld [vmem:[%s4988_s5 + $0x114] sm:$0xf0]  ;;  %v3184_v49 = vor.u32 %v3607_v46, %v3183_v41  ;;  %v3044_v50 = vor.u32 %v3568_v43, %v3041_v44  ;;  %v3601_v52 = vld [vmem:[%s4988_s5 + $0x10c] sm:$0xf0] }
 0x1dd   : > { %1572 = vmatpush.bf16.msra.mxu1 %v3108_v5  ;;  %1597 = vmatpush.bf16.msra.mxu3 %v3140_v11  ;;  %v3159_v51 = vld [vmem:[%s4988_s5 + $0xf8] sm:$0xf]  ;;  %v3168_v53 = vor.u32 %v3602_v48, %v3167_v47  ;;  %v3143_v54 = vld [vmem:[%s4988_s5 + $0xd0] sm:$0xf]  ;;  %v3596_v55 = vld [vmem:[%s4988_s5 + $0xe4] sm:$0xf0] }
 0x1de   : > { %1581 = vmatpush.bf16.msra.mxu2 %v3208_v45  ;;  %v3160_v56 = vor.u32 %v3601_v52, %v3159_v51  ;;  %v3135_v57 = vld [vmem:[%s4988_s5 + $0xc8] sm:$0xf]  ;;  %v3595_v58 = vld [vmem:[%s4988_s5 + $0xdc] sm:$0xf0]  ;;  %v3144_v59 = vor.u32 %v3596_v55, %v3143_v54  ;;  %v3590_v61 = vld [vmem:[%s4988_s5 + $0xb4] sm:$0xf0] }
 0x1df   : > { %v3119_v60 = vld [vmem:[%s4988_s5 + $0xa0] sm:$0xf]  ;;  %v3136_v62 = vor.u32 %v3595_v58, %v3135_v57  ;;  %v3111_v63 = vld [vmem:[%s4988_s5 + $0x98] sm:$0xf]  ;;  %v3589_v0 = vld [vmem:[%s4988_s5 + $0xac] sm:$0xf0] }
 0x1e0   : > { %1560 = vmatpush.bf16.msra.mxu0 %v3080_v8  ;;  %v3120_v1 = vor.u32 %v3590_v61, %v3119_v60  ;;  %v3095_v2 = vld [vmem:[%s4988_s5 + $0x70] sm:$0xf]  ;;  %v3584_v3 = vld [vmem:[%s4988_s5 + $0x84] sm:$0xf0]  ;;  %v3112_v4 = vor.u32 %v3589_v0, %v3111_v63  ;;  %v3071_v6 = vld [vmem:[%s4988_s5 + $0x40] sm:$0xf] }
 0x1e1   : > { %1573 = vmatpush.bf16.msra.mxu1 %v3084_v16  ;;  %1598 = vmatpush.bf16.msra.mxu3 %v3116_v19  ;;  %v3096_v5 = vor.u32 %v3584_v3, %v3095_v2  ;;  %v3578_v7 = vld [vmem:[%s4988_s5 + $0x54] sm:$0xf0]  ;;  %v3047_v9 = vld [vmem:[%s4988_s5 + $0x10] sm:$0xf]  ;;  %v3572_v10 = vld [vmem:[%s4988_s5 + $0x24] sm:$0xf0] }
 0x1e2   : > { %1582 = vmatpush.bf16.msra.mxu2 %v3184_v49  ;;  %v3072_v8 = vor.u32 %v3578_v7, %v3071_v6  ;;  %v3048_v11 = vor.u32 %v3572_v10, %v3047_v9  ;;  %v3087_v12 = vld [vmem:[%s4988_s5 + $0x68] sm:$0xf]  ;;  %v3583_v13 = vld [vmem:[%s4988_s5 + $0x7c] sm:$0xf0]  ;;  %v3063_v15 = vld [vmem:[%s4988_s5 + $0x38] sm:$0xf] }
 0x1e3   : > { %v3088_v14 = vor.u32 %v3583_v13, %v3087_v12  ;;  %v3577_v16 = vld [vmem:[%s4988_s5 + $0x4c] sm:$0xf0]  ;;  %v3039_v18 = vld [vmem:[%s4988_s5 + $0x8] sm:$0xf]  ;;  %v3571_v19 = vld [vmem:[%s4988_s5 + $0x1c] sm:$0xf0] }
 0x1e4   : > { %1561 = vmatpush.bf16.msra.mxu0 %v3056_v17  ;;  %v3064_v17 = vor.u32 %v3577_v16, %v3063_v15  ;;  %v3040_v20 = vor.u32 %v3571_v19, %v3039_v18  ;;  %v5171_v21 = vld [vmem:[%s4997_s26] sm:$0x3f]  ;;  %v3193_v33 = vld [vmem:[%s4988_s5 + $0x148] sm:$0xf0]  ;;  %v3169_v47 = vld [vmem:[%s4988_s5 + $0x118] sm:$0xf0] }
 0x1e5   : > { %1574 = vmatpush.bf16.msra.mxu1 %v3060_v25  ;;  %1599 = vmatpush.bf16.msra.mxu3 %v3092_v30  ;;  %v1304_v22 = vperm.slane %v5171_v21, 1  ;;  %v1303_v23 = vperm.slane %v5171_v21, 0  ;;  %v3217_v30 = vld [vmem:[%s4988_s5 + $0x178] sm:$0xf0]  ;;  %v1307_v40 = vperm.slane %v5171_v21, 4  ;;  %v1306_v41 = vperm.slane %v5171_v21, 3 }
 0x1e6   : > { %1583 = vmatpush.bf16.msra.mxu2 %v3160_v56  ;;  %v3599_v46 = vld [vmem:[%s4988_s5 + $0x104] sm:$0xf]  ;;  %v3593_v49 = vld [vmem:[%s4988_s5 + $0xd4] sm:$0xf]  ;;  %v3097_v56 = vld [vmem:[%s4988_s5 + $0x88] sm:$0xf0] }
 0x1e7   : > { %v3172_v48 = vor.u32 %v3599_v46, %v3169_v47  ;;  %v3587_v52 = vld [vmem:[%s4988_s5 + $0xa4] sm:$0xf]  ;;  %v3581_v55 = vld [vmem:[%s4988_s5 + $0x74] sm:$0xf]  ;;  %v3049_v0 = vld [vmem:[%s4988_s5 + $0x28] sm:$0xf0] }
 0x1e8   : > { %1562 = vmatpush.bf16.msra.mxu0 %v3032_v28  ;;  %v3611_v28 = vld [vmem:[%s4988_s5 + $0x164] sm:$0xf]  ;;  %v3100_v57 = vor.u32 %v3581_v55, %v3097_v56  ;;  %v3569_v63 = vld [vmem:[%s4988_s5 + $0x14] sm:$0xf]  ;;  %v3913_v6 = vld [vmem:[%s5514_s10] ss:$0 sm:$0xff] }
 0x1e9   : > { %1575 = vmatpush.bf16.msra.mxu1 %v3036_v36  ;;  %1600 = vmatpush.bf16.msra.mxu3 %v3068_v38  ;;  %v3220_v32 = vor.u32 %v3611_v28, %v3217_v30  ;;  %v3575_v58 = vld [vmem:[%s4988_s5 + $0x44] sm:$0xf]  ;;  %vm1659_vm4 = vcmask 64512   ;;  %v3629_v30 = vld [vmem:[%s5004_s21 + $0x70] sm:$0xff]  ;;  %v3624_v56 = vld [vmem:[%s5004_s21 + $0x48] sm:$0xff]  ;;  %s5515_s24 = sld [smem:[#allocation63_spill]] }
 0x1ea   : > { %1584 = vmatpush.bf16.msra.mxu2 %v3136_v62  ;;  %v1305_v62 = vperm.slane %v5171_v21, 2  ;;  %v3622_v28 = vld [vmem:[%s5004_s21 + $0x38] sm:$0xff]  ;;  %v3625_v47 = vld [vmem:[%s5004_s21 + $0x50] sm:$0xff]  ;;  %s5517_s14 = scalar_lea.vmem [#allocation14], %s4985_s11  ;;  %s5522_s4 = sld [smem:[#allocation43_spill]] }
 0x1eb   : > { %1563 = vmatmul.bf16.vlgmr.msra.gmra.mxu0 %v5133_v37 }
 0x1ec   : > { %1607 = vmatpush.bf16.msrb.mxu0 %v3216_v31  ;;  %1576 = vmatmul.bf16.vlgmr.msra.gmra.mxu1 %v5133_v37  ;;  %v3605_v31 = vld [vmem:[%s4988_s5 + $0x134] sm:$0xf] }
 0x1ed   : > { %1601 = vmatpush.bf16.msra.mxu3 %v3044_v50  ;;  %1620 = vmatpush.bf16.msrb.mxu1 %v3220_v32  ;;  %v3196_v35 = vor.u32 %v3605_v31, %v3193_v33  ;;  %v3145_v50 = vld [vmem:[%s4988_s5 + $0xe8] sm:$0xf0]  ;;  %v3621_v31 = vld [vmem:[%s5004_s21 + $0x30] sm:$0xff]  ;;  %v3628_v33 = vld [vmem:[%s5004_s21 + $0x68] sm:$0xff] }
 0x1ee   : > { %1585 = vmatpush.bf16.msra.mxu2 %v3112_v4  ;;  %v3148_v51 = vor.u32 %v3593_v49, %v3145_v50 }
 0x1ef   : > { %s5516_s2 = scalar_lea.vmem %s5515_s24, %s5045_s6 }
 0x1f0   : > { %1608 = vmatpush.bf16.msrb.mxu0 %v3192_v42  ;;  %1602 = vmatmul.bf16.vlgmr.msra.gmra.mxu3 %v5133_v37  ;;  %p3431_p9 = scmp.ne.s32.totalorder %s5522_s4, 1 }
 0x1f1   : > { %1621 = vmatpush.bf16.msrb.mxu1 %v3196_v35  ;;  %v3619_v35 = vld [vmem:[%s5004_s21 + $0x20] sm:$0xff]  ;;  %s5523_s6 = sld [smem:[#allocation73_spill]] (!%p3431_p9) }
 0x1f2   : > { %1586 = vmatpush.bf16.msra.mxu2 %v3088_v14  ;;  %s5524_s28 = sld [smem:[#allocation75_spill]] (!%p3431_p9) }
 0x1f3   : > { %s5525_s1 = sld [smem:[#allocation77_spill]] (!%p3431_p9) }
 0x1f4   : > { %1609 = vmatpush.bf16.msrb.mxu0 %v3168_v53  ;;  %v3121_v53 = vld [vmem:[%s4988_s5 + $0xb8] sm:$0xf0]  ;;  %s5526_s16 = sld [smem:[#allocation79_spill]] (!%p3431_p9) }
 0x1f5   : > { %1622 = vmatpush.bf16.msrb.mxu1 %v3172_v48  ;;  %v3124_v54 = vor.u32 %v3587_v52, %v3121_v53  ;;  %v3617_v48 = vld [vmem:[%s5004_s21 + $0x10] sm:$0xff] }
 0x1f6   : > { %1587 = vmatpush.bf16.msra.mxu2 %v3064_v17 }
 0x1f8   : > { %1610 = vmatpush.bf16.msrb.mxu0 %v3144_v59  ;;  %v3073_v59 = vld [vmem:[%s4988_s5 + $0x58] sm:$0xf0] }
 0x1f9   : > { %1623 = vmatpush.bf16.msrb.mxu1 %v3148_v51  ;;  %v3076_v61 = vor.u32 %v3575_v58, %v3073_v59 }
 0x1fa   : > { %1588 = vmatpush.bf16.msra.mxu2 %v3040_v20 }
 0x1fc   : > { %1611 = vmatpush.bf16.msrb.mxu0 %v3120_v1  ;;  %v3052_v1 = vor.u32 %v3569_v63, %v3049_v0 }
 0x1fd   : > { %1589 = vmatmul.bf16.vlgmr.msra.gmra.mxu2 %v5133_v37  ;;  %1624 = vmatpush.bf16.msrb.mxu1 %v3124_v54 }
 0x200   : > { %1612 = vmatpush.bf16.msrb.mxu0 %v3096_v5 }
 0x201   : > { %1625 = vmatpush.bf16.msrb.mxu1 %v3100_v57  ;;  %v3616_v57 = vld [vmem:[%s5004_s21 + $0x8] sm:$0xff] }
 0x204   : > { %1613 = vmatpush.bf16.msrb.mxu0 %v3072_v8 }
 0x205   : > { %1626 = vmatpush.bf16.msrb.mxu1 %v3076_v61 }
 0x208   : > { %1614 = vmatpush.bf16.msrb.mxu0 %v3048_v11 }
 0x209   : > { %1627 = vmatpush.bf16.msrb.mxu1 %v3052_v1 }
 0x20b   : > { %1615 = vmatmul.bf16.vlgmr.msrb.gmra.mxu0 %v5133_v37 }
 0x20c   : > { %1628 = vmatmul.bf16.vlgmr.msrb.gmra.mxu1 %v5133_v37 }
 0x268   : > { %v1564_v24 = vpop.f32.mrf.mxu0 }
 0x269   : > { %v1577_v25 = vpop.f32.mrf.mxu1  ;;  %v1565_v27 = vadd.f32 %v1564_v24, %v1303_v23  ;;  %v1308_v24 = vperm.slane %v5171_v21, 5  ;;  %v3627_v21 = vld [vmem:[%s5004_s21 + $0x60] sm:$0xff] }
 0x26a   : > { %v1578_v26 = vadd.f32 %v1577_v25, %v1304_v22 }
 0x26c   : > { %1652 = vmatpush.xpose.msra.mxu0 %v1578_v26 }
 0x26f   : > { %1653 = vmatmul.f32.vlgmr.msra.gmra.mxu0 %v1565_v27  ;;  %v3630_v27 = vld [vmem:[%s5004_s21 + $0x78] sm:$0xff] }
 0x270   : > { %v1566_v34 = vpop.f32.mrf.mxu0 }
 0x271   : > { %v1579_v36 = vpop.f32.mrf.mxu1  ;;  %v3620_v34 = vld [vmem:[%s5004_s21 + $0x28] sm:$0xff] }
 0x273   : > { %v1603_v38 = vpop.f32.mrf.mxu3 }
 0x274   : > { %v1604_v44 = vadd.f32 %v1603_v38, %v1306_v41  ;;  %v3626_v41 = vld [vmem:[%s5004_s21 + $0x58] sm:$0xff] }
 0x27b   : > { %v1605_v39 = vpop.f32.mrf.mxu3 }
 0x280   : > { %v1590_v60 = vpop.f32.mrf.mxu2 }
 0x281   : > { %v1591_v2 = vadd.f32 %v1590_v60, %v1305_v62 }
 0x283   : > { %1702 = vmatpush.msra.mxu1 %v1591_v2  ;;  %v3623_v2 = vld [vmem:[%s5004_s21 + $0x40] sm:$0xff] }
 0x288   : > { %v1616_v42 = vpop.f32.mrf.mxu0  ;;  %v1592_v3 = vpop.f32.mrf.mxu2 }
 0x289   : > { %v1617_v43 = vadd.f32 %v1616_v42, %v1307_v40  ;;  %v1629_v23 = vpop.f32.mrf.mxu1  ;;  %v3618_v42 = vld [vmem:[%s5004_s21 + $0x18] sm:$0xff]  ;;  %v3615_v3 = vld [vmem:[%s5004_s21] sm:$0xff] }
 0x28a   : > { %v1630_v25 = vadd.f32 %v1629_v23, %v1308_v24 }
 0x28b   : > { %1739 = vmatpush.xpose.msrb.mxu2 %v1617_v43 }
 0x28c   : > { %1788 = vmatpush.msrb.mxu3 %v1630_v25 }
 0x28e   : > { %1740 = vmatmul.f32.vlgmr.msrb.gmra.mxu2 %v1604_v44  ;;  %1920 = vmatpush.bf16.msra.mxu3 %v3622_v28 }
 0x28f   : > { %1859 = vmatpush.bf16.msra.mxu2 %v3630_v27 }
 0x290   : > { %v1618_v45 = vpop.f32.mrf.mxu0 }
 0x291   : > { %v1631_v26 = vpop.f32.mrf.mxu1 }
 0x292   : > { %1921 = vmatpush.bf16.msra.mxu3 %v3621_v31 }
 0x293   : > { %1860 = vmatpush.bf16.msra.mxu2 %v3629_v30 }
 0x296   : > { %1922 = vmatpush.bf16.msra.mxu3 %v3620_v34  ;;  %v3644_v34 = vld [vmem:[%s5017_s17 + $0x64] sm:$0xf0] }
 0x297   : > { %1861 = vmatpush.bf16.msra.mxu2 %v3628_v33  ;;  %v3353_v33 = vld [vmem:[%s5017_s17 + $0x60] sm:$0xf] }
 0x29a   : > { %1923 = vmatpush.bf16.msra.mxu3 %v3619_v35  ;;  %v3354_v35 = vor.u32 %v3644_v34, %v3353_v33  ;;  %v3660_v33 = vld [vmem:[%s5025_s27 + $0x68] sm:$0xff]  ;;  %v3651_v34 = vld [vmem:[%s5025_s27 + $0x20] sm:$0xff] }
 0x29b   : > { %1862 = vmatpush.bf16.msra.mxu2 %v3627_v21  ;;  %v3643_v21 = vld [vmem:[%s5017_s17 + $0x64] sm:$0xf] }
 0x29e   : > { %1924 = vmatpush.bf16.msra.mxu3 %v3618_v42 }
 0x29f   : > { %1863 = vmatpush.bf16.msra.mxu2 %v3626_v41  ;;  %v3641_v41 = vld [vmem:[%s5017_s17 + $0x54] sm:$0xf] }
 0x2a2   : > { %1925 = vmatpush.bf16.msra.mxu3 %v3617_v48 }
 0x2a3   : > { %1864 = vmatpush.bf16.msra.mxu2 %v3625_v47  ;;  %v3639_v47 = vld [vmem:[%s5017_s17 + $0x44] sm:$0xf] }
 0x2a6   : > { %1926 = vmatpush.bf16.msra.mxu3 %v3616_v57  ;;  %v3321_v57 = vld [vmem:[%s5017_s17 + $0x20] sm:$0xf] }
 0x2a7   : > { %1865 = vmatpush.bf16.msra.mxu2 %v3624_v56 }
 0x2aa   : > { %1927 = vmatpush.bf16.msra.mxu3 %v3615_v3  ;;  %v3315_v3 = vld [vmem:[%s5017_s17 + $0x18] sm:$0xf0] }
 0x2ab   : > { %1866 = vmatpush.bf16.msra.mxu2 %v3623_v2 }
 0x2ec   : > { %v1654_v7 = vpop.f32.mrf.mxu0 }
 0x2ed   : > { %v1657_v9 = vmul.f32 0.125, %v1654_v7 }
 0x2ef   : > { %v1658_v11 = vadd.f32 %v3913_v6, %v1657_v9  ;;  %v3914_v9 = vld [vmem:[%s5516_s2] ss:$0 sm:$0xff] }
 0x2f1   : > { %v1660_v12 = vsel %vm1659_vm4, %v1658_v11, -inf }
 0x311   : > { %v1741_v4 = vpop.f32.mrf.mxu2 }
 0x312   : > { %v1744_v5 = vmul.f32 0.125, %v1741_v4 }
 0x314   : > { %v1745_v8 = vadd.f32 %v3913_v6, %v1744_v5 }
 0x316   : > { %v1746_v10 = vsel %vm1659_vm4, %v1745_v8, -inf }
 0x317   : > { %1747 = vmax.xlane.f32.xlu0 %v1746_v10 }
 0x31f   : > { %1661 = vmax.xlane.f32.xlu0 %v1660_v12 }
 0x38a   : > { %v1748_v13 = vpop.xlane.xlu0 %1747 }
 0x38b   : > { %v1749_v14 = vsub.f32 %v1745_v8, %v1748_v13 }
 0x38d   : > { %v1750_v15 = vmul.f32 1.442695, %v1749_v14 }
 0x38f   : > { %3920 = vpow2.f32 %v1750_v15 }
 0x392   : > { %v1662_v37 = vpop.xlane.xlu0 %1661 }
 0x393   : > { %v1663_v16 = vsub.f32 %v1658_v11, %v1662_v37  ;;  %v4545_v37 = vmov 128.0  }
 0x395   : > { %v3921_v17 = vpop.eup %3920  ;;  %v1664_v18 = vmul.f32 1.442695, %v1663_v16  ;;  %v3361_v16 = vld [vmem:[%s5017_s17 + $0x70] sm:$0xf] }
 0x396   : > { %v1752_v19 = vsel %vm1659_vm4, %v3921_v17, 0.0 }
 0x397   : > { %3922 = vpow2.f32 %v1664_v18  ;;  %1753 = vadd.xlane.f32.xlu1 %v1752_v19  ;;  %v3645_v18 = vld [vmem:[%s5017_s17 + $0x74] sm:$0xf] }
 0x39d   : > { %v5200_v20 = vpop.eup %3922 }
 0x39e   : > { %v1666_v22 = vsel %vm1659_vm4, %v5200_v20, 0.0 }
 0x39f   : > { %1667 = vadd.xlane.f32.xlu1 %v1666_v22 }
 0x40a   : > { %v1754_v32 = vpop.xlane.xlu1 %1753 }
 0x40b   : > { %3924 = vrcp.f32 %v1754_v32  ;;  %v1766_v43 = vand.u32 2147483648, %v1754_v32  ;;  %v1764_v45 = vand.u32 2147483647, %v1754_v32  ;;  %vm1760_vm6 = vweird.f32 %v1754_v32 }
 0x40d   : > { %v1767_v50 = vor.u32 1.1754944e-38, %v1766_v43  ;;  %vm1765_vm8 = vcmp.eq.f32.partialorder %v1764_v45, 8.507059e+37  ;;  %v3347_v43 = vld [vmem:[%s5017_s17 + $0x58] sm:$0xf0]  ;;  %v3337_v45 = vld [vmem:[%s5017_s17 + $0x40] sm:$0xf] }
 0x411   : > { %v3925_v36 = vpop.eup %3924 }
 0x412   : > { %v1756_v38 = vmul.f32 %v3925_v36, %v1754_v32  ;;  %v1668_v39 = vpop.xlane.xlu1 %1667  ;;  %vm1761_vm5 = vweird.f32 %v3925_v36 }
 0x413   : > { %3926 = vrcp.f32 %v1668_v39  ;;  %vm1762_vm7 = vmor %vm1760_vm6, %vm1761_vm5  ;;  %v1680_v58 = vand.u32 2147483648, %v1668_v39  ;;  %v1678_v60 = vand.u32 2147483647, %v1668_v39  ;;  %vm1674_vm10 = vweird.f32 %v1668_v39 }
 0x414   : > { %v1757_v40 = vsub.f32 1.0, %v1756_v38  ;;  %3928 = vrcp.f32 %v4545_v37 }
 0x415   : > { %v1681_v62 = vor.u32 1.1754944e-38, %v1680_v58  ;;  %vm1679_vm12 = vcmp.eq.f32.partialorder %v1678_v60, 8.507059e+37  ;;  %v3636_v58 = vld [vmem:[%s5017_s17 + $0x24] sm:$0xf0] }
 0x416   : > { %v1758_v44 = vmul.f32 %v3925_v36, %v1757_v40  ;;  %v3642_v40 = vld [vmem:[%s5017_s17 + $0x54] sm:$0xf0]  ;;  %v3322_v60 = vor.u32 %v3636_v58, %v3321_v57 }
 0x418   : > { %v1759_v46 = vadd.f32 %v3925_v36, %v1758_v44  ;;  %v3350_v44 = vor.u32 %v3641_v41, %v3347_v43  ;;  %v3656_v41 = vld [vmem:[%s5025_s27 + $0x48] sm:$0xff]  ;;  %v3655_v43 = vld [vmem:[%s5025_s27 + $0x40] sm:$0xff] }
 0x419   : > { %v3927_v49 = vpop.eup %3926 }
 0x41a   : > { %v1670_v51 = vmul.f32 %v3927_v49, %v1668_v39  ;;  %v1763_v52 = vsel %vm1762_vm7, %v3925_v36, %v1759_v46  ;;  %vm1675_vm9 = vweird.f32 %v3927_v49  ;;  %v3929_v23 = vpop.eup %3928  ;;  %v3355_v36 = vld [vmem:[%s5017_s17 + $0x68] sm:$0xf0]  ;;  %v3345_v39 = vld [vmem:[%s5017_s17 + $0x50] sm:$0xf]  ;;  %v3640_v46 = vld [vmem:[%s5017_s17 + $0x44] sm:$0xf0] }
 0x41b   : > { %v1768_v53 = vsel %vm1765_vm8, %v1767_v50, %v1763_v52  ;;  %vm1676_vm11 = vmor %vm1674_vm10, %vm1675_vm9  ;;  %v1944_v24 = vmul.f32 128.0, %v3929_v23  ;;  %vm1948_vm13 = vweird.f32 %v3929_v23  ;;  %v3358_v38 = vor.u32 %v3643_v21, %v3355_v36  ;;  %v3638_v52 = vld [vmem:[%s5017_s17 + $0x34] sm:$0xf0]  ;;  %v3659_v21 = vld [vmem:[%s5025_s27 + $0x60] sm:$0xff] }
 0x41c   : > { %v1671_v54 = vsub.f32 1.0, %v1670_v51  ;;  %v1769_v55 = vmul.f32 %v3921_v17, %v1768_v53  ;;  %v3646_v17 = vld [vmem:[%s5017_s17 + $0x74] sm:$0xf0]  ;;  %v3346_v42 = vor.u32 %v3642_v40, %v3345_v39  ;;  %v3338_v48 = vor.u32 %v3640_v46, %v3337_v45  ;;  %v3329_v51 = vld [vmem:[%s5017_s17 + $0x30] sm:$0xf]  ;;  %v3648_v40 = vld [vmem:[%s5025_s27 + $0x8] sm:$0xff] }
 0x41d   : > { %v3362_v19 = vor.u32 %v3646_v17, %v3361_v16  ;;  %v3637_v53 = vld [vmem:[%s5017_s17 + $0x34] sm:$0xf]  ;;  %v3658_v36 = vld [vmem:[%s5025_s27 + $0x58] sm:$0xff] }
 0x41e   : > { %v1672_v59 = vmul.f32 %v3927_v49, %v1671_v54  ;;  %3222 = vmatmul.msk.f32.vlgmr.msrb.gmra.mxu3 %vm1659_vm4, %v1769_v55  ;;  %v3330_v54 = vor.u32 %v3638_v52, %v3329_v51  ;;  %v3331_v55 = vld [vmem:[%s5017_s17 + $0x38] sm:$0xf0]  ;;  %v3657_v39 = vld [vmem:[%s5025_s27 + $0x50] sm:$0xff] }
 0x41f   : > { %2079 = vmatpush.bf16.msrb.mxu0 %v3362_v19  ;;  %v3334_v56 = vor.u32 %v3637_v53, %v3331_v55 }
 0x420   : > { %v1673_v61 = vadd.f32 %v3927_v49, %v1672_v59  ;;  %v3635_v59 = vld [vmem:[%s5017_s17 + $0x24] sm:$0xf] }
 0x422   : > { %v1677_v63 = vsel %vm1676_vm11, %v3927_v49, %v1673_v61  ;;  %v3339_v49 = vld [vmem:[%s5017_s17 + $0x48] sm:$0xf0] }
 0x423   : > { %v1682_v0 = vsel %vm1679_vm12, %v1681_v62, %v1677_v63  ;;  %2080 = vmatpush.bf16.msrb.mxu0 %v3354_v35  ;;  %v3342_v50 = vor.u32 %v3639_v47, %v3339_v49  ;;  %v3323_v61 = vld [vmem:[%s5017_s17 + $0x28] sm:$0xf0]  ;;  %v3313_v63 = vld [vmem:[%s5017_s17 + $0x10] sm:$0xf]  ;;  %v3650_v35 = vld [vmem:[%s5025_s27 + $0x18] sm:$0xff] }
 0x424   : > { %v1683_v1 = vmul.f32 %v5200_v20, %v1682_v0  ;;  %v3363_v20 = vld [vmem:[%s5017_s17 + $0x78] sm:$0xf0]  ;;  %v3326_v62 = vor.u32 %v3635_v59, %v3323_v61  ;;  %v3634_v0 = vld [vmem:[%s5017_s17 + $0x14] sm:$0xf0] }
 0x425   : > { %v3366_v22 = vor.u32 %v3645_v18, %v3363_v20  ;;  %v3314_v2 = vor.u32 %v3634_v0, %v3313_v63 }
 0x426   : > { %3221 = vmatmul.msk.f32.vlgmr.msra.gmra.mxu1 %vm1659_vm4, %v1683_v1  ;;  %v3633_v1 = vld [vmem:[%s5017_s17 + $0x14] sm:$0xf] }
 0x427   : > { %2092 = vmatpush.bf16.msrb.mxu1 %v3366_v22  ;;  %2081 = vmatpush.bf16.msrb.mxu0 %v3346_v42  ;;  %v3915_v22 = vld [vmem:[%s5517_s14] ss:$0 sm:$0xff]  ;;  %v3647_v42 = vld [vmem:[%s5025_s27] sm:$0xff] }
 0x42b   : > { %2093 = vmatpush.bf16.msrb.mxu1 %v3358_v38  ;;  %2082 = vmatpush.bf16.msrb.mxu0 %v3338_v48  ;;  %v3649_v38 = vld [vmem:[%s5025_s27 + $0x10] sm:$0xff] }
 0x42f   : > { %2094 = vmatpush.bf16.msrb.mxu1 %v3350_v44  ;;  %2083 = vmatpush.bf16.msrb.mxu0 %v3330_v54  ;;  %v1993_v44 = vld [vmem:[%s5063_s12] sm:$0x3] }
 0x430   : > { %v1995_v45 = vperm.slane %v1993_v44, 0  ;;  %v1996_v46 = vperm.slane %v1993_v44, 1 }
 0x433   : > { %2095 = vmatpush.bf16.msrb.mxu1 %v3342_v50  ;;  %2084 = vmatpush.bf16.msrb.mxu0 %v3322_v60 }
 0x437   : > { %2096 = vmatpush.bf16.msrb.mxu1 %v3334_v56  ;;  %2085 = vmatpush.bf16.msrb.mxu0 %v3314_v2 }
 0x43b   : > { %2097 = vmatpush.bf16.msrb.mxu1 %v3326_v62 }
 0x4a1   : > { %v1790_v4 = vpop.f32.mrf.mxu3 }
 0x4a2   : > { %v1793_v5 = vpack.c.bf16 %v1790_v4, %v1790_v4  ;;  %v3318_v4 = vor.u32 %v3633_v1, %v3315_v3 }
 0x4a3   : > { %v1704_v6 = vpop.f32.mrf.mxu1 }
 0x4a4   : > { %v1707_v7 = vpack.c.bf16 %v1704_v6, %v1704_v6  ;;  %1867 = vmatmul.bf16.vlgmr.msra.gmra.mxu2 %v1793_v5  ;;  %v3305_v5 = vld [vmem:[%s5017_s17] sm:$0xf]  ;;  %v3632_v6 = vld [vmem:[%s5017_s17 + $0x4] sm:$0xf0]  ;;  %2098 = vmatpush.bf16.msrb.mxu1 %v3318_v4 }
 0x4a6   : > { %1928 = vmatmul.bf16.vlgmr.msra.gmra.mxu3 %v1707_v7  ;;  %v3631_v7 = vld [vmem:[%s5017_s17 + $0x4] sm:$0xf] }
 0x527   : > { %v1868_v8 = vpop.f32.mrf.mxu2 }
 0x529   : > { %v1929_v10 = vpop.f32.mrf.mxu3 }
 0x52a   : > { %v1930_v11 = vadd.f32 %v1929_v10, %v1868_v8  ;;  %v3306_v8 = vor.u32 %v3632_v6, %v3305_v5 }
 0x52c   : > { %v1937_v12 = vadd.f32 %v3914_v9, %v1930_v11  ;;  %v3307_v9 = vld [vmem:[%s5017_s17 + $0x8] sm:$0xf0]  ;;  %2086 = vmatpush.bf16.msrb.mxu0 %v3306_v8  ;;  %v3654_v11 = vld [vmem:[%s5025_s27 + $0x38] sm:$0xff] }
 0x52d   : > { %v3310_v10 = vor.u32 %v3631_v7, %v3307_v9  ;;  %2257 = vmatpush.bf16.msrb.mxu2 %v3654_v11  ;;  %v3917_v9 = vld [vmem:[%s1201_s30] ss:$0 sm:$0xff] }
 0x52e   : > { %v1938_v13 = vadd.f32 %v1937_v12, %v5125_v29  ;;  %v1945_v29 = vsub.f32 1.0, %v1944_v24  ;;  %v3662_v12 = vld [vmem:[%s5025_s27 + $0x78] sm:$0xff] }
 0x52f   : > { %v1870_v14 = vpop.f32.mrf.mxu2  ;;  %2099 = vmatpush.bf16.msrb.mxu1 %v3310_v10  ;;  %2270 = vmatpush.bf16.msrb.mxu3 %v3662_v12 }
 0x530   : > { %1941 = vadd.xlane.f32.xlu2 %v1938_v13  ;;  %v1946_v25 = vmul.f32 %v3929_v23, %v1945_v29  ;;  %v3916_v29 = vld [vmem:[%s1194_s3] ss:$0 sm:$0xff] }
 0x531   : > { %v1931_v15 = vpop.f32.mrf.mxu3 }
 0x532   : > { %v1947_v26 = vadd.f32 %v3929_v23, %v1946_v25 }
 0x534   : > { %v5234_v27 = vsel %vm1948_vm13, %v3929_v23, %v1947_v26 }
 0x5a3   : > { %v1942_v28 = vpop.xlane.xlu2 %1941 }
 0x5a4   : > { %v1950_v30 = vmul.f32 %v5234_v27, %v1942_v28 }
 0x5a6   : > { %v5237_v31 = vsub.f32 %v1938_v13, %v1950_v30  ;;  %v3653_v30 = vld [vmem:[%s5025_s27 + $0x30] sm:$0xff] }
 0x5a7   : > { %2258 = vmatpush.bf16.msrb.mxu2 %v3653_v30 }
 0x5a8   : > { %v1952_v32 = vmul.f32 %v5237_v31, %v5237_v31 }
 0x5aa   : > { %1953 = vadd.xlane.f32.xlu2 %v1952_v32  ;;  %v3661_v32 = vld [vmem:[%s5025_s27 + $0x70] sm:$0xff] }
 0x5ab   : > { %2271 = vmatpush.bf16.msrb.mxu3 %v3661_v32  ;;  %v3918_v32 = vld [vmem:[%s1204_s20] ss:$0 sm:$0xff] }
 0x5af   : > { %2272 = vmatpush.bf16.msrb.mxu3 %v3660_v33 }
 0x5b3   : > { %2273 = vmatpush.bf16.msrb.mxu3 %v3659_v21 }
 0x5b7   : > { %2274 = vmatpush.bf16.msrb.mxu3 %v3658_v36 }
 0x5bb   : > { %2275 = vmatpush.bf16.msrb.mxu3 %v3657_v39 }
 0x5bf   : > { %2276 = vmatpush.bf16.msrb.mxu3 %v3656_v41 }
 0x5c3   : > { %2277 = vmatpush.bf16.msrb.mxu3 %v3655_v43 }
 0x61d   : > { %v1954_v13 = vpop.xlane.xlu2 %1953 }
 0x61e   : > { %v1955_v14 = vmul.f32 %v1954_v13, %v5234_v27 }
 0x620   : > { %v1956_v15 = vadd.f32 1e-12, %v1955_v14 }
 0x622   : > { %3930 = vrsqrt.f32 %v1956_v15  ;;  %vm1963_vm15 = vweird.f32 %v1956_v15 }
 0x628   : > { %v3931_v37 = vpop.eup %3930 }
 0x629   : > { %v1958_v16 = vmul.f32 %v3931_v37, %v1956_v15  ;;  %vm1964_vm14 = vweird.f32 %v3931_v37 }
 0x62a   : > { %vm1965_vm0 = vmor %vm1963_vm15, %vm1964_vm14 }
 0x62b   : > { %v1959_v17 = vmul.f32 %v3931_v37, %v1958_v16 }
 0x62d   : > { %v1960_v18 = vmul.f32 0.5, %v1959_v17 }
 0x62f   : > { %v1961_v19 = vsub.f32 1.5, %v1960_v18 }
 0x631   : > { %v1962_v20 = vmul.f32 %v3931_v37, %v1961_v19 }
 0x633   : > { %v1966_v23 = vsel %vm1965_vm0, %v3931_v37, %v1962_v20 }
 0x634   : > { %v1967_v24 = vmul.f32 %v1966_v23, %v5237_v31  ;;  %v3652_v31 = vld [vmem:[%s5025_s27 + $0x28] sm:$0xff] }
 0x635   : > { %2259 = vmatpush.bf16.msrb.mxu2 %v3652_v31 }
 0x636   : > { %v1971_v25 = vmul.f32 %v3915_v22, %v1967_v24 }
 0x638   : > { %v5280_v26 = vadd.f32 %v3916_v29, %v1971_v25 }
 0x639   : > { %2260 = vmatpush.bf16.msrb.mxu2 %v3651_v34 }
 0x63a   : > { %v1976_v28 = vpack.c.bf16 %v5280_v26, %v5280_v26 }
 0x63c   : > { %2087 = vmatmul.bf16.vlgmr.msrb.gmra.mxu0 %v1976_v28  ;;  %2100 = vmatmul.bf16.vlgmr.msrb.gmra.mxu1 %v1976_v28 }
 0x63d   : > { %2261 = vmatpush.bf16.msrb.mxu2 %v3650_v35 }
 0x641   : > { %2262 = vmatpush.bf16.msrb.mxu2 %v3649_v38 }
 0x645   : > { %2263 = vmatpush.bf16.msrb.mxu2 %v3648_v40 }
 0x649   : > { %2264 = vmatpush.bf16.msrb.mxu2 %v3647_v42 }
 0x6b9   : > { %v2088_v47 = vpop.f32.mrf.mxu0  ;;  %v2101_v48 = vpop.f32.mrf.mxu1 }
 0x6ba   : > { %v2089_v49 = vadd.f32 %v2088_v47, %v1995_v45  ;;  %v2102_v50 = vadd.f32 %v2101_v48, %v1996_v46 }
 0x6bc   : > { %v2105_v51 = vmul.f32 %v2089_v49, %v2089_v49  ;;  %v2106_v52 = vmul.f32 %v2102_v50, %v2102_v50 }
 0x6be   : > { %v2107_v53 = vmul.f32 %v2105_v51, %v2089_v49  ;;  %v2108_v54 = vmul.f32 %v2106_v52, %v2102_v50 }
 0x6c0   : > { %v2109_v55 = vmul.f32 0.044715, %v2107_v53  ;;  %v2110_v56 = vmul.f32 0.044715, %v2108_v54 }
 0x6c1   : > { %v2090_v57 = vpop.f32.mrf.mxu0  ;;  %v2103_v58 = vpop.f32.mrf.mxu1 }
 0x6c2   : > { %v2111_v59 = vadd.f32 %v2109_v55, %v2089_v49  ;;  %v2112_v60 = vadd.f32 %v2110_v56, %v2102_v50 }
 0x6c4   : > { %v2113_v61 = vmul.f32 0.7978846, %v2111_v59  ;;  %v2114_v62 = vmul.f32 0.7978846, %v2112_v60 }
 0x6c6   : > { %3932 = vtanh.f32 %v2113_v61 }
 0x6c7   : > { %3934 = vtanh.f32 %v2114_v62 }
 0x6cc   : > { %v3933_v63 = vpop.eup %3932 }
 0x6cd   : > { %v3935_v0 = vpop.eup %3934  ;;  %v2117_v1 = vadd.f32 1.0, %v3933_v63 }
 0x6ce   : > { %v2118_v2 = vadd.f32 1.0, %v3935_v0 }
 0x6cf   : > { %v2119_v3 = vmul.f32 0.5, %v2117_v1 }
 0x6d0   : > { %v2120_v4 = vmul.f32 0.5, %v2118_v2 }
 0x6d1   : > { %v2121_v5 = vmul.f32 %v2119_v3, %v2089_v49 }
 0x6d2   : > { %v2122_v6 = vmul.f32 %v2120_v4, %v2102_v50 }
 0x6d3   : > { %v2123_v7 = vpack.c.bf16 %v2121_v5, %v2121_v5 }
 0x6d4   : > { %v2124_v8 = vpack.c.bf16 %v2122_v6, %v2122_v6 }
 0x6d5   : > { %2265 = vmatmul.bf16.vlgmr.msrb.gmra.mxu2 %v2123_v7 }
 0x6d6   : > { %2278 = vmatmul.bf16.vlgmr.msrb.gmra.mxu3 %v2124_v8 }
 0x758   : > { %v2266_v10 = vpop.f32.mrf.mxu2 }
 0x759   : > { %v2267_v11 = vadd.f32 %v3917_v9, %v2266_v10  ;;  %v2279_v12 = vpop.f32.mrf.mxu3 }
 0x75b   : > { %v2280_v13 = vadd.f32 %v2279_v12, %v2267_v11 }
 0x75d   : > { %v2283_v14 = vadd.f32 %v2280_v13, %v5280_v26 }
 0x75f   : > { %2286 = vadd.xlane.f32.xlu0 %v2283_v14 }
 0x760   : > { %v2268_v15 = vpop.f32.mrf.mxu2 }
 0x761   : > { %v2281_v37 = vpop.f32.mrf.mxu3 }
 0x7d2   : > { %v2287_v16 = vpop.xlane.xlu0 %2286 }
 0x7d3   : > { %v2288_v17 = vmul.f32 %v2287_v16, %v5234_v27 }
 0x7d5   : > { %v2289_v18 = vsub.f32 %v2283_v14, %v2288_v17 }
 0x7d7   : > { %v2290_v19 = vmul.f32 %v2289_v18, %v2289_v18 }
 0x7d9   : > { %2291 = vadd.xlane.f32.xlu1 %v2290_v19 }
 0x84c   : > { %v2292_v20 = vpop.xlane.xlu1 %2291 }
 0x84d   : > { %v2293_v22 = vmul.f32 %v2292_v20, %v5234_v27  ;;  %v3919_v27 = vld [vmem:[%s1207_s7] ss:$0 sm:$0xff] }
 0x84f   : > { %v2294_v23 = vadd.f32 1e-12, %v2293_v22 }
 0x851   : > { %3936 = vrsqrt.f32 %v2294_v23  ;;  %vm2301_vm2 = vweird.f32 %v2294_v23 }
 0x857   : > { %v3937_v24 = vpop.eup %3936 }
 0x858   : > { %v2296_v29 = vmul.f32 %v3937_v24, %v2294_v23  ;;  %vm2302_vm1 = vweird.f32 %v3937_v24 }
 0x859   : > { %vm2303_vm3 = vmor %vm2301_vm2, %vm2302_vm1 }
 0x85a   : > { %v2297_v25 = vmul.f32 %v3937_v24, %v2296_v29 }
 0x85c   : > { %v2298_v26 = vmul.f32 0.5, %v2297_v25 }
 0x85e   : > { %v2299_v28 = vsub.f32 1.5, %v2298_v26 }
 0x860   : > { %v2300_v30 = vmul.f32 %v3937_v24, %v2299_v28 }
 0x862   : > { %v2304_v31 = vsel %vm2303_vm3, %v3937_v24, %v2300_v30 }
 0x863   : > { %v2305_v33 = vmul.f32 %v2304_v31, %v2289_v18 }
 0x865   : > { %v2309_v34 = vmul.f32 %v3918_v32, %v2305_v33  ;;  %2318 = sbr.rel (%p3431_p9) target bundleno = 2735 (0xaaf), region = 180 }
 0x867   : > { %v2313_v21 = vadd.f32 %v3919_v27, %v2309_v34 }
 0x869   : > { %2314 = vst [vmem:[#allocation2] sm:$0xff] %v2313_v21 }
 0x86a   : > { %v3670_v35 = vld [vmem:[#allocation17 + $0x38] sm:$0xff]  ;;  %v3669_v36 = vld [vmem:[#allocation17 + $0x30] sm:$0xff]  ;;  %v3668_v40 = vld [vmem:[#allocation17 + $0x28] sm:$0xff]  ;;  %v2319_v49 = vpack.c.bf16 %v2313_v21, %v2313_v21 }
 0x86b   : > { %2385 = vmatpush.bf16.msra.mxu0 %v3670_v35  ;;  %v3678_v38 = vld [vmem:[#allocation18 + $0x38] sm:$0xff]  ;;  %v3677_v39 = vld [vmem:[#allocation18 + $0x30] sm:$0xff]  ;;  %v3676_v41 = vld [vmem:[#allocation18 + $0x28] sm:$0xff] }
 0x86c   : > { %2465 = vmatpush.bf16.msra.mxu1 %v3678_v38  ;;  %v3667_v42 = vld [vmem:[#allocation17 + $0x20] sm:$0xff]  ;;  %v3666_v44 = vld [vmem:[#allocation17 + $0x18] sm:$0xff]  ;;  %v3665_v46 = vld [vmem:[#allocation17 + $0x10] sm:$0xff] }
 0x86d   : > { %v3675_v43 = vld [vmem:[#allocation18 + $0x20] sm:$0xff]  ;;  %v3674_v45 = vld [vmem:[#allocation18 + $0x18] sm:$0xff]  ;;  %v3664_v47 = vld [vmem:[#allocation17 + $0x8] sm:$0xff] }
 0x86e   : > { %v3663_v48 = vld [vmem:[#allocation17] sm:$0xff]  ;;  %v3673_v50 = vld [vmem:[#allocation18 + $0x10] sm:$0xff]  ;;  %v3672_v51 = vld [vmem:[#allocation18 + $0x8] sm:$0xff] }
 0x86f   : > { %2386 = vmatpush.bf16.msra.mxu0 %v3669_v36  ;;  %v3671_v52 = vld [vmem:[#allocation18] sm:$0xff]  ;;  %v3686_v53 = vld [vmem:[#allocation20 + $0x38] sm:$0xff]  ;;  %v3685_v54 = vld [vmem:[#allocation20 + $0x30] sm:$0xff] }
 0x870   : > { %2466 = vmatpush.bf16.msra.mxu1 %v3677_v39  ;;  %2547 = vmatpush.bf16.msra.mxu2 %v3686_v53  ;;  %v3684_v55 = vld [vmem:[#allocation20 + $0x28] sm:$0xff]  ;;  %v3683_v56 = vld [vmem:[#allocation20 + $0x20] sm:$0xff]  ;;  %v3682_v57 = vld [vmem:[#allocation20 + $0x18] sm:$0xff] }
 0x871   : > { %v2336_v58 = vld [vmem:[%s5523_s6] sm:$0x1]  ;;  %v3680_v1 = vld [vmem:[#allocation20 + $0x8] sm:$0xff]  ;;  %v3679_v2 = vld [vmem:[#allocation20] sm:$0xff] }
 0x872   : > { %v3681_v59 = vld [vmem:[#allocation20 + $0x10] sm:$0xff]  ;;  %v3694_v3 = vld [vmem:[#allocation21 + $0x38] sm:$0xff]  ;;  %v3692_v5 = vld [vmem:[#allocation21 + $0x28] sm:$0xff] }
 0x873   : > { %2387 = vmatpush.bf16.msra.mxu0 %v3668_v40  ;;  %2629 = vmatpush.bf16.msra.mxu3 %v3694_v3  ;;  %v3693_v4 = vld [vmem:[#allocation21 + $0x30] sm:$0xff]  ;;  %v3691_v6 = vld [vmem:[#allocation21 + $0x20] sm:$0xff]  ;;  %v3690_v7 = vld [vmem:[#allocation21 + $0x18] sm:$0xff] }
 0x874   : > { %2467 = vmatpush.bf16.msra.mxu1 %v3676_v41  ;;  %2548 = vmatpush.bf16.msra.mxu2 %v3685_v54  ;;  %v3689_v8 = vld [vmem:[#allocation21 + $0x10] sm:$0xff]  ;;  %v3688_v37 = vld [vmem:[#allocation21 + $0x8] sm:$0xff]  ;;  %v3687_v16 = vld [vmem:[#allocation21] sm:$0xff] }
 0x875   : > { %v2416_v9 = vld [vmem:[%s5524_s28] sm:$0x1] }
 0x876   : > { %v2498_v17 = vld [vmem:[%s5525_s1] sm:$0x1] }
 0x877   : > { %2388 = vmatpush.bf16.msra.mxu0 %v3667_v42  ;;  %2630 = vmatpush.bf16.msra.mxu3 %v3693_v4  ;;  %v2580_v29 = vld [vmem:[%s5526_s16] sm:$0x1] }
 0x878   : > { %2468 = vmatpush.bf16.msra.mxu1 %v3675_v43  ;;  %2549 = vmatpush.bf16.msra.mxu2 %v3684_v55 }
 0x87b   : > { %2389 = vmatpush.bf16.msra.mxu0 %v3666_v44  ;;  %2631 = vmatpush.bf16.msra.mxu3 %v3692_v5 }
 0x87c   : > { %2469 = vmatpush.bf16.msra.mxu1 %v3674_v45  ;;  %2550 = vmatpush.bf16.msra.mxu2 %v3683_v56 }
 0x87f   : > { %2390 = vmatpush.bf16.msra.mxu0 %v3665_v46  ;;  %2632 = vmatpush.bf16.msra.mxu3 %v3691_v6 }
 0x880   : > { %2470 = vmatpush.bf16.msra.mxu1 %v3673_v50  ;;  %2551 = vmatpush.bf16.msra.mxu2 %v3682_v57 }
 0x883   : > { %2391 = vmatpush.bf16.msra.mxu0 %v3664_v47  ;;  %2633 = vmatpush.bf16.msra.mxu3 %v3690_v7 }
 0x884   : > { %2471 = vmatpush.bf16.msra.mxu1 %v3672_v51  ;;  %2552 = vmatpush.bf16.msra.mxu2 %v3681_v59 }
 0x887   : > { %2392 = vmatpush.bf16.msra.mxu0 %v3663_v48  ;;  %2634 = vmatpush.bf16.msra.mxu3 %v3689_v8 }
 0x888   : > { %2472 = vmatpush.bf16.msra.mxu1 %v3671_v52  ;;  %2553 = vmatpush.bf16.msra.mxu2 %v3680_v1 }
 0x88a   : > { %2393 = vmatmul.bf16.vlgmr.msra.gmra.mxu0 %v2319_v49 }
 0x88b   : > { %2635 = vmatpush.bf16.msra.mxu3 %v3688_v37 }
 0x88c   : > { %2554 = vmatpush.bf16.msra.mxu2 %v3679_v2 }
 0x88f   : > { %2636 = vmatpush.bf16.msra.mxu3 %v3687_v16 }
 0x907   : > { %v2394_v60 = vpop.f32.mrf.mxu0 }
 0x908   : > { %v2395_v61 = vadd.f32 %v2394_v60, %v2336_v58 }
 0x90a   : > { %3938 = vtanh.f32 %v2395_v61 }
 0x90f   : > { %v2396_v62 = vpop.f32.mrf.mxu0 }
 0x910   : > { %v3939_v63 = vpop.eup %3938 }
 0x911   : > { %v2399_v0 = vpack.c.bf16 %v3939_v63, %v3939_v63 }
 0x913   : > { %2473 = vmatmul.bf16.vlgmr.msra.gmra.mxu1 %v2399_v0 }
 0x990   : > { %v2474_v10 = vpop.f32.mrf.mxu1 }
 0x991   : > { %v2475_v11 = vadd.f32 %v2474_v10, %v2416_v9 }
 0x993   : > { %v2479_v12 = vmul.f32 0.01, %v2475_v11  ;;  %vm2478_vm4 = vcmp.ge.f32.partialorder %v2475_v11, 0.0 }
 0x995   : > { %v2480_v13 = vsel %vm2478_vm4, %v2475_v11, %v2479_v12 }
 0x996   : > { %v2481_v14 = vpack.c.bf16 %v2480_v13, %v2480_v13 }
 0x998   : > { %v2476_v15 = vpop.f32.mrf.mxu1  ;;  %2555 = vmatmul.bf16.vlgmr.msra.gmra.mxu2 %v2481_v14 }
 0xa1b   : > { %v2556_v18 = vpop.f32.mrf.mxu2 }
 0xa1c   : > { %v2557_v19 = vadd.f32 %v2556_v18, %v2498_v17 }
 0xa1e   : > { %v2561_v20 = vmul.f32 0.01, %v2557_v19  ;;  %vm2560_vm5 = vcmp.ge.f32.partialorder %v2557_v19, 0.0 }
 0xa20   : > { %v2562_v22 = vsel %vm2560_vm5, %v2557_v19, %v2561_v20 }
 0xa21   : > { %v2563_v23 = vpack.c.bf16 %v2562_v22, %v2562_v22 }
 0xa23   : > { %v2558_v24 = vpop.f32.mrf.mxu2  ;;  %2637 = vmatmul.bf16.vlgmr.msra.gmra.mxu3 %v2563_v23 }
 0xaa6   : > { %v2638_v25 = vpop.f32.mrf.mxu3 }
 0xaa7   : > { %v2639_v26 = vadd.f32 %v2638_v25, %v2580_v29 }
 0xaa9   : > { %vm2642_vm6 = vcmp.ge.f32.partialorder %v2639_v26, 0.0  ;;  %v2643_v28 = vmul.f32 0.01, %v2639_v26 }
 0xaab   : > { %v2644_v30 = vsel %vm2642_vm6, %v2639_v26, %v2643_v28 }
 0xaac   : > { %v2645_v32 = vperm.slane %v2644_v30, 0 }
 0xaae   : > { %2646 = vst [vmem:[%s5075_s0] sm:$0xff] %v2645_v32  ;;  %v2640_v31 = vpop.f32.mrf.mxu3 }
 0xaaf PF: > { %s5527_s22 = sld [smem:[#allocation44_spill]]  ;;  %s2660_s11 = sshll.u32 %s5075_s0, 4  ;;  %s2661_s11 = int_to_ptr.vmem [resolvable:$true] %s2660_s11 }
 0xab0   : > { %s5529_s26 = sld [smem:[#allocation80_spill]]  ;;  %s2648_s30 = scalar_lea.sflag [#allocation5], %s4956_s13 }
 0xab5   : > { %s3561_s2 = sshll.u32 %s5527_s22, 3 }
 0xab6   : > { %s5530_s21 = smov %s5529_s26  ;;  %s2658_s12 = scalar_lea.hbm %s5529_s26, %s3561_s2 }
 0xab7   : > { %s2662_s17 = sshll.u32 %s2658_s12, 4  ;;  %s4380_s3 = scalar_lea.hbm %s5530_s21, 16  ;;  %s2663_s17 = int_to_ptr.hbm [resolvable:$true] %s2662_s17 }
 0xab8   : > { %s4374_s27 = sshra.s32 %s2663_s17, 4  ;;  %s4375_s27 = int_to_ptr.hbm [resolvable:$true] %s4374_s27 }
 0xab9   : > { %s4376_s8 = scalar_lea.hbm %s4375_s27, 8  ;;  %p4381_p11 = scmp.lt.s32.totalorder %s4375_s27, %s5530_s21 }
 0xaba   : > { %p4377_p12 = scmp.ne.s32.totalorder %s4375_s27, %s4376_s8  ;;  %p4382_p8 = scmp.lt.s32.totalorder %s4380_s3, %s4376_s8 }
 0xabc   : > { %p4378_p2 = pnand %p4377_p12, %p4813_p0  ;;  %p4383_p13 = por %p4382_p8, %p4381_p11 }
 0xabe   : > { %p4379_p6 = pneg %p4378_p2 }
 0xac0   : > { %p4384_p7 = pnand %p4383_p13, %p4379_p6 }
 0xac2   : > { %4387 = shalt.err (!%p4384_p7)
}
 0xac3   : > { %3741 = dma.vmem_to_hbm [thread:$0]  (%p4813_p0), %s2661_s11, 128, %s2663_s17, %s2648_s30  }
 0xac4 PF: > { %s5531_s13 = sld [smem:[#allocation47_spill]] }
 0xac5   : > { %s5532_s0 = sld [smem:[#allocation40_spill]] }
 0xaca   : > { %p3804_p10 = scmp.ge.s32.totalorder %s5531_s13, 2 }
 0xacb   : > { %s2674_s6 = sand.u32 1, %s5532_s0  }
 0xacc   : > { %p3788_p5 = pnand %p3804_p10, %p4821_p4  ;;  %s2675_s19 = scalar_lea.sflag [#allocation5], %s2674_s6 }
 0xace   : > { %p3789_p3 = pneg %p3788_p5 }
 0xad0   : > { %4485 = dma.done.wait (%p3789_p3), %s2675_s19, 128  }
 0xad1   : > { %4487 = vsyncadd (%p3789_p3), %s2675_s19, 4294967168  ;;  %s46_s3 = sadd.s32 1, %s5531_s13   ;;  %s5534_s5 = sld [smem:[#allocation38_spill]] }
 0xad2   : > { %p43_p1 = scmp.ge.s32.totalorder %s46_s3, 6   ;;  %s5535_s26 = sld [smem:[#allocation39_spill]] }
 0xad3   : > { %s5536_s27 = sld [smem:[#allocation51_spill]] }
 0xad4   : > { %s5537_s28 = sld [smem:[#allocation41_spill]] }
 0xad5   : > { %s5538_s6 = sld [smem:[#allocation42_spill]] }
 0xad6   : > { %s5539_s2 = sld [smem:[#allocation52_spill]]  ;;  %45 = sbr.rel (!%p43_p1) target bundleno = 40 (0x28), region = 291 }
 0xad7   : > { %s5540_s29 = sld [smem:[#allocation45_spill]] }
 0xad8   : > { %s5541_s0 = sld [smem:[#allocation46_spill]] }
 0xad9   : > { %s5542_s7 = sld [smem:[#allocation48_spill]] }
 0xada   : > { %s5543_s30 = sld [smem:[#allocation50_spill]] }
 0xadb   :  { %2681 = vsyncpa [#allocation4], 1 }
 0xadc   :  { %2683 = vsyncpa [#allocation4 + $0x1], 1 }
 0xadd   :  { %2684 = vsyncpa [#allocation7], 1 }
 0xade   :  { %2686 = vsyncpa [#allocation7 + $0x1], 1 }
 0xadf   :  { %2687 = vsyncpa [#allocation10], 1 }
 0xae0   :  { %2688 = vsyncpa [#allocation19], 1 }
 0xae1   :  { %2689 = vsyncpa [#allocation22], 1 }
 0xae2   :  { %2690 = vsyncpa [#allocation5], 1 }
 0xae3   :  { %2692 = vsyncpa [#allocation5 + $0x1], 1 }

</bundles_post_ra>
